<compile_context>
chip_gen: v7x
topology: tpu7x:2x2x1
jax: 0.10.0
libtpu: 0.0.40
codegen_flags: <defaults>
</compile_context>

<pallas_src>
import functools

import jax
import jax.numpy as jnp
from jax import lax
from jax.experimental import pallas as pl
from jax.experimental.pallas import tpu as pltpu

NEG_SLOPE = 0.2
BN_EPS = 1e-5


def _pick_vmem_limit():
    """Generation-aware scoped-VMEM budget (v5e/v6e -> 96 MiB, v7x -> ~48 MiB)."""
    limit = 64 * 1024 * 1024
    try:
        phys = int(pltpu.get_tpu_info().vmem_capacity_bytes)
        if phys >= 64 * 1024 * 1024:
            limit = min(phys * 3 // 4, 96 * 1024 * 1024)
    except Exception:
        pass
    return limit


def conv2d_block_pallas(x, weight, *, kernel_size=4, stride=2, padding=1,
                        use_bn=True, use_relu=True, block_rows=1024,
                        compute_dtype=jnp.bfloat16):
    """Forward pass of Conv2DBlock.

    x:      (N, Cin, H, W) float32
    weight: (Cout, Cin, KH, KW) float32
    Returns (N, Cout, OH, OW) float32 (NCHW, matching the PyTorch module).

    block_rows:    target GEMM rows per grid step (TOH*OW), ~1k amortizes the
                   per-step pipeline overhead on v6e/v5e while staying VMEM-safe.
    compute_dtype: dtype of the matmul inputs; bf16 by default (MXU-native on
                   v5e/v6e/v7x, halves HBM traffic), accumulation stays f32.
                   Pass None to keep full f32 inputs.
    """
    N, Cin, H, W = x.shape
    Cout, Cin_w, KH, KW = weight.shape
    assert Cin_w == Cin and KH == kernel_size and KW == kernel_size
    S = stride
    # TODO(synk): conv bias (use_bias=True) is not plumbed; module default is bias=False.

    OH = (H + 2 * padding - KH) // S + 1
    OW = (W + 2 * padding - KW) // S + 1
    M = N * OH * OW

    # LeakyReLU on the raw (un-expanded) input; fuses with the pad/phase slicing below.
    if use_relu:
        x = jnp.where(x >= 0, x, NEG_SLOPE * x)

    # NHWC + spatial zero-pad (pad zeros are LeakyReLU-invariant either way).
    xp = jnp.transpose(x, (0, 2, 3, 1))
    xp = jnp.pad(xp, ((0, 0), (padding, padding), (padding, padding), (0, 0)))

    # ---- stride-phase split (cheap XLA slicing; total bytes == input size) ----
    # phase[p = b*S + d][n, i, j, c] == xp[n, b + S*i, d + S*j, c]
    # so conv tap (kh, kw) with kh = S*a + b, kw = S*c + d reads the UNIT-STRIDE
    # window phase[p][oh + a, ow + c, :] — no strided access inside the kernel.
    a_max = (KH - 1) // S
    c_max = (KW - 1) // S
    TOH = max(1, min(OH, max(1, block_rows // max(OW, 1))))   # output rows per tile
    T = -(-OH // TOH)                                         # number of OH tiles
    PH = T * TOH + a_max                                      # phase rows kept (covers halo + tail)
    PW = OW + c_max

    cdt = x.dtype if compute_dtype is None else compute_dtype
    phase_list = []
    for b in range(S):
        for d in range(S):
            ph = xp[:, b::S, d::S, :]
            ph = ph[:, :PH, :PW, :]
            ph = jnp.pad(ph, ((0, 0), (0, PH - ph.shape[1]),
                              (0, PW - ph.shape[2]), (0, 0)))
            phase_list.append(ph)
    # (N, S*S*PH, PW, Cin): phase p occupies rows [p*PH, (p+1)*PH)
    phases = jnp.concatenate(phase_list, axis=1).astype(cdt)

    # Per-tap weights (KH*KW, Cin, Cout); resident in VMEM across the whole grid.
    w_taps = jnp.transpose(weight, (2, 3, 1, 0)).reshape(KH * KW, Cin, Cout).astype(cdt)

    rows = TOH * OW
    SSPH = S * S * PH

    def kernel(ph_ref, w_ref, y_ref, sum_ref, sq_ref):
        # ph_ref : (1, S*S*PH, PW, Cin)  whole padded image (phase form) for batch n
        # w_ref  : (KH*KW, Cin, Cout)    resident tap weights
        # y_ref  : (1, TOH, OW, Cout)    conv output tile (f32)
        # sum_ref/sq_ref : (1, 1, 1, Cout) per-tile BN partial sums
        t = pl.program_id(1)
        acc = jnp.zeros((rows, Cout), jnp.float32)
        for kh in range(KH):
            a, b = divmod(kh, S)
            for kw in range(KW):
                c, d = divmod(kw, S)
                p = b * S + d
                tap = ph_ref[0, pl.ds(p * PH + t * TOH + a, TOH), pl.ds(c, OW), :]
                acc = acc + jnp.dot(tap.reshape(rows, Cin), w_ref[kh * KW + kw],
                                    preferred_element_type=jnp.float32)
        y3 = acc.reshape(TOH, OW, Cout)
        y_ref[...] = y3[None].astype(y_ref.dtype)

        # Partial BN sums, masking the padded tail rows of the last OH tile.
        row_ids = lax.broadcasted_iota(jnp.int32, (TOH, 1, 1), 0)
        valid = (row_ids + t * TOH) < OH
        y3m = jnp.where(valid, y3, 0.0)
        sum_ref[...] = jnp.sum(y3m, axis=(0, 1)).reshape(1, 1, 1, Cout)
        sq_ref[...] = jnp.sum(y3m * y3m, axis=(0, 1)).reshape(1, 1, 1, Cout)

    y_full, psum, psq = pl.pallas_call(
        kernel,
        grid=(N, T),
        in_specs=[
            # Whole phase slab stays resident across the inner t axis (fetched once per n).
            # TODO(synk): tile PH with a manual-DMA halo for very large spatial / tiny Cin.
            pl.BlockSpec((1, SSPH, PW, Cin), lambda n, t: (n, 0, 0, 0)),
            pl.BlockSpec((KH * KW, Cin, Cout), lambda n, t: (0, 0, 0)),
        ],
        out_specs=[
            pl.BlockSpec((1, TOH, OW, Cout), lambda n, t: (n, t, 0, 0)),
            pl.BlockSpec((1, 1, 1, Cout), lambda n, t: (n, t, 0, 0)),
            pl.BlockSpec((1, 1, 1, Cout), lambda n, t: (n, t, 0, 0)),
        ],
        out_shape=[
            jax.ShapeDtypeStruct((N, T * TOH, OW, Cout), jnp.float32),
            jax.ShapeDtypeStruct((N, T, 1, Cout), jnp.float32),
            jax.ShapeDtypeStruct((N, T, 1, Cout), jnp.float32),
        ],
        compiler_params=pltpu.CompilerParams(
            dimension_semantics=("parallel", "parallel"),
            vmem_limit_bytes=_pick_vmem_limit()),
    )(phases, w_taps)

    y = y_full[:, :OH]                                   # drop padded tail rows
    if use_bn:
        tot = jnp.sum(psum, axis=(0, 1, 2))              # (Cout,)
        totsq = jnp.sum(psq, axis=(0, 1, 2))             # (Cout,)
        mean = tot / M
        # Biased variance (BatchNorm2d training-time normalization); clamp guards the
        # E[y^2]-E[y]^2 cancellation. Sums are f32 over O(1) values -> adequate here.
        var = jnp.maximum(totsq / M - mean * mean, 0.0)
        inv_std = lax.rsqrt(var + BN_EPS)
        y = (y - mean) * inv_std                         # fused by XLA into the transpose
    # TODO(synk): an NHWC-consuming caller could skip this transpose entirely.
    out = jnp.transpose(y, (0, 3, 1, 2))                 # back to NCHW
    return out


if __name__ == "__main__":
    key = jax.random.PRNGKey(0)
    k_x, k_w = jax.random.split(key)

    N, Cin, H, W = 2, 4, 16, 16
    Cout, ksize, stride, pad = 8, 4, 2, 1

    x = jax.random.normal(k_x, (N, Cin, H, W), dtype=jnp.float32)
    weight = 0.1 * jax.random.normal(k_w, (Cout, Cin, ksize, ksize),
                                     dtype=jnp.float32)

    fwd = jax.jit(functools.partial(conv2d_block_pallas,
                                    kernel_size=ksize, stride=stride, padding=pad))
    out = fwd(x, weight)
    jax.block_until_ready(out)
    assert out.shape == (N, Cout, H // 2, W // 2), out.shape

    # Correctness check against a pure-JAX f32 reference of the same module.
    def ref_fn(xr, w):
        xr = jnp.where(xr >= 0, xr, NEG_SLOPE * xr)
        yr = lax.conv_general_dilated(
            xr, w, window_strides=(stride, stride),
            padding=[(pad, pad), (pad, pad)],
            dimension_numbers=("NCHW", "OIHW", "NCHW"))
        m = jnp.mean(yr, axis=(0, 2, 3), keepdims=True)
        v = jnp.mean((yr - m) ** 2, axis=(0, 2, 3), keepdims=True)
        return (yr - m) * lax.rsqrt(v + BN_EPS)

    ref = jax.jit(ref_fn)(x, weight)
    max_err = float(jnp.max(jnp.abs(out - ref)))
    assert jnp.allclose(out, ref, atol=3e-2, rtol=3e-2), max_err

    print("KERNEL_OK")
</pallas_src>

<mosaic_0001>
module attributes {stable_mosaic.version = 11 : i64} {
  func.func @kernel(%arg0: i32, %arg1: i32, %arg2: memref<1x36x9x4xbf16, #tpu.memory_space<vmem>>, %arg3: memref<16x4x8xbf16, #tpu.memory_space<vmem>>, %arg4: memref<1x8x8x8xf32, #tpu.memory_space<vmem>>, %arg5: memref<1x1x1x8xf32, #tpu.memory_space<vmem>>, %arg6: memref<1x1x1x8xf32, #tpu.memory_space<vmem>>) attributes {dimension_semantics = [#tpu.dimension_semantics<parallel>, #tpu.dimension_semantics<parallel>], iteration_bounds = array<i64: 2, 1>, scalar_prefetch = 0 : i64, scratch_operands = 0 : i64, tpu.core_type = #tpu.core_type<tc>, window_params = [{transform_indices = @transform_0, window_bounds = array<i64: 1, 36, 9, 4>}, {pipeline_mode = #tpu.pipeline_mode<synchronous>, transform_indices = @transform_1, window_bounds = array<i64: 16, 4, 8>}, {transform_indices = @transform_2, window_bounds = array<i64: 1, 8, 8, 8>}, {transform_indices = @transform_3, window_bounds = array<i64: 1, 1, 1, 8>}, {transform_indices = @transform_4, window_bounds = array<i64: 1, 1, 1, 8>}]} {
    %cst = arith.constant 0.000000e+00 : f32
    %0 = vector.broadcast %cst : f32 to vector<64x8xf32>
    %c8_i32 = arith.constant 8 : i32
    %1 = arith.muli %arg1, %c8_i32 : i32
    %c0_i32 = arith.constant 0 : i32
    %2 = arith.addi %c0_i32, %1 : i32
    %c0_i32_0 = arith.constant 0 : i32
    %3 = arith.addi %2, %c0_i32_0 : i32
    %c0 = arith.constant 0 : index
    %4 = arith.index_cast %3 : i32 to index
    %c0_1 = arith.constant 0 : index
    %c0_2 = arith.constant 0 : index
    %5 = vector.load %arg2[%c0, %4, %c0_1, %c0_2] : memref<1x36x9x4xbf16, #tpu.memory_space<vmem>>, vector<1x8x8x4xbf16>
    %6 = vector.shape_cast %5 : vector<1x8x8x4xbf16> to vector<8x8x4xbf16>
    %7 = vector.shape_cast %6 : vector<8x8x4xbf16> to vector<64x4xbf16>
    %c0_3 = arith.constant 0 : index
    %c0_4 = arith.constant 0 : index
    %c0_5 = arith.constant 0 : index
    %8 = vector.load %arg3[%c0_3, %c0_4, %c0_5] : memref<16x4x8xbf16, #tpu.memory_space<vmem>>, vector<1x4x8xbf16>
    %9 = vector.shape_cast %8 : vector<1x4x8xbf16> to vector<4x8xbf16>
    %cst_6 = arith.constant dense<0.000000e+00> : vector<64x8xf32>
    %10 = tpu.matmul %7, %9, %cst_6 {dimension_numbers = #tpu.dot_dimension_numbers<[1], [0], [0], [1], [0, 0, 1, 1], [], []>} : vector<64x4xbf16>, vector<4x8xbf16>, vector<64x8xf32> -> vector<64x8xf32>
    %11 = arith.addf %0, %10 : vector<64x8xf32>
    %c8_i32_7 = arith.constant 8 : i32
    %12 = arith.muli %arg1, %c8_i32_7 : i32
    %c9_i32 = arith.constant 9 : i32
    %13 = arith.addi %c9_i32, %12 : i32
    %c0_i32_8 = arith.constant 0 : i32
    %14 = arith.addi %13, %c0_i32_8 : i32
    %c0_9 = arith.constant 0 : index
    %15 = arith.index_cast %14 : i32 to index
    %c0_10 = arith.constant 0 : index
    %c0_11 = arith.constant 0 : index
    %16 = vector.load %arg2[%c0_9, %15, %c0_10, %c0_11] : memref<1x36x9x4xbf16, #tpu.memory_space<vmem>>, vector<1x8x8x4xbf16>
    %17 = vector.shape_cast %16 : vector<1x8x8x4xbf16> to vector<8x8x4xbf16>
    %18 = vector.shape_cast %17 : vector<8x8x4xbf16> to vector<64x4xbf16>
    %c1 = arith.constant 1 : index
    %c0_12 = arith.constant 0 : index
    %c0_13 = arith.constant 0 : index
    %19 = vector.load %arg3[%c1, %c0_12, %c0_13] : memref<16x4x8xbf16, #tpu.memory_space<vmem>>, vector<1x4x8xbf16>
    %20 = vector.shape_cast %19 : vector<1x4x8xbf16> to vector<4x8xbf16>
    %cst_14 = arith.constant dense<0.000000e+00> : vector<64x8xf32>
    %21 = tpu.matmul %18, %20, %cst_14 {dimension_numbers = #tpu.dot_dimension_numbers<[1], [0], [0], [1], [0, 0, 1, 1], [], []>} : vector<64x4xbf16>, vector<4x8xbf16>, vector<64x8xf32> -> vector<64x8xf32>
    %22 = arith.addf %11, %21 : vector<64x8xf32>
    %c8_i32_15 = arith.constant 8 : i32
    %23 = arith.muli %arg1, %c8_i32_15 : i32
    %c0_i32_16 = arith.constant 0 : i32
    %24 = arith.addi %c0_i32_16, %23 : i32
    %c0_i32_17 = arith.constant 0 : i32
    %25 = arith.addi %24, %c0_i32_17 : i32
    %c0_18 = arith.constant 0 : index
    %26 = arith.index_cast %25 : i32 to index
    %c1_19 = arith.constant 1 : index
    %c0_20 = arith.constant 0 : index
    %27 = vector.load %arg2[%c0_18, %26, %c1_19, %c0_20] : memref<1x36x9x4xbf16, #tpu.memory_space<vmem>>, vector<1x8x8x4xbf16>
    %28 = vector.shape_cast %27 : vector<1x8x8x4xbf16> to vector<8x8x4xbf16>
    %29 = vector.shape_cast %28 : vector<8x8x4xbf16> to vector<64x4xbf16>
    %c2 = arith.constant 2 : index
    %c0_21 = arith.constant 0 : index
    %c0_22 = arith.constant 0 : index
    %30 = vector.load %arg3[%c2, %c0_21, %c0_22] : memref<16x4x8xbf16, #tpu.memory_space<vmem>>, vector<1x4x8xbf16>
    %31 = vector.shape_cast %30 : vector<1x4x8xbf16> to vector<4x8xbf16>
    %cst_23 = arith.constant dense<0.000000e+00> : vector<64x8xf32>
    %32 = tpu.matmul %29, %31, %cst_23 {dimension_numbers = #tpu.dot_dimension_numbers<[1], [0], [0], [1], [0, 0, 1, 1], [], []>} : vector<64x4xbf16>, vector<4x8xbf16>, vector<64x8xf32> -> vector<64x8xf32>
    %33 = arith.addf %22, %32 : vector<64x8xf32>
    %c8_i32_24 = arith.constant 8 : i32
    %34 = arith.muli %arg1, %c8_i32_24 : i32
    %c9_i32_25 = arith.constant 9 : i32
    %35 = arith.addi %c9_i32_25, %34 : i32
    %c0_i32_26 = arith.constant 0 : i32
    %36 = arith.addi %35, %c0_i32_26 : i32
    %c0_27 = arith.constant 0 : index
    %37 = arith.index_cast %36 : i32 to index
    %c1_28 = arith.constant 1 : index
    %c0_29 = arith.constant 0 : index
    %38 = vector.load %arg2[%c0_27, %37, %c1_28, %c0_29] : memref<1x36x9x4xbf16, #tpu.memory_space<vmem>>, vector<1x8x8x4xbf16>
    %39 = vector.shape_cast %38 : vector<1x8x8x4xbf16> to vector<8x8x4xbf16>
    %40 = vector.shape_cast %39 : vector<8x8x4xbf16> to vector<64x4xbf16>
    %c3 = arith.constant 3 : index
    %c0_30 = arith.constant 0 : index
    %c0_31 = arith.constant 0 : index
    %41 = vector.load %arg3[%c3, %c0_30, %c0_31] : memref<16x4x8xbf16, #tpu.memory_space<vmem>>, vector<1x4x8xbf16>
    %42 = vector.shape_cast %41 : vector<1x4x8xbf16> to vector<4x8xbf16>
    %cst_32 = arith.constant dense<0.000000e+00> : vector<64x8xf32>
    %43 = tpu.matmul %40, %42, %cst_32 {dimension_numbers = #tpu.dot_dimension_numbers<[1], [0], [0], [1], [0, 0, 1, 1], [], []>} : vector<64x4xbf16>, vector<4x8xbf16>, vector<64x8xf32> -> vector<64x8xf32>
    %44 = arith.addf %33, %43 : vector<64x8xf32>
    %c8_i32_33 = arith.constant 8 : i32
    %45 = arith.muli %arg1, %c8_i32_33 : i32
    %c18_i32 = arith.constant 18 : i32
    %46 = arith.addi %c18_i32, %45 : i32
    %c0_i32_34 = arith.constant 0 : i32
    %47 = arith.addi %46, %c0_i32_34 : i32
    %c0_35 = arith.constant 0 : index
    %48 = arith.index_cast %47 : i32 to index
    %c0_36 = arith.constant 0 : index
    %c0_37 = arith.constant 0 : index
    %49 = vector.load %arg2[%c0_35, %48, %c0_36, %c0_37] : memref<1x36x9x4xbf16, #tpu.memory_space<vmem>>, vector<1x8x8x4xbf16>
    %50 = vector.shape_cast %49 : vector<1x8x8x4xbf16> to vector<8x8x4xbf16>
    %51 = vector.shape_cast %50 : vector<8x8x4xbf16> to vector<64x4xbf16>
    %c4 = arith.constant 4 : index
    %c0_38 = arith.constant 0 : index
    %c0_39 = arith.constant 0 : index
    %52 = vector.load %arg3[%c4, %c0_38, %c0_39] : memref<16x4x8xbf16, #tpu.memory_space<vmem>>, vector<1x4x8xbf16>
    %53 = vector.shape_cast %52 : vector<1x4x8xbf16> to vector<4x8xbf16>
    %cst_40 = arith.constant dense<0.000000e+00> : vector<64x8xf32>
    %54 = tpu.matmul %51, %53, %cst_40 {dimension_numbers = #tpu.dot_dimension_numbers<[1], [0], [0], [1], [0, 0, 1, 1], [], []>} : vector<64x4xbf16>, vector<4x8xbf16>, vector<64x8xf32> -> vector<64x8xf32>
    %55 = arith.addf %44, %54 : vector<64x8xf32>
    %c8_i32_41 = arith.constant 8 : i32
    %56 = arith.muli %arg1, %c8_i32_41 : i32
    %c27_i32 = arith.constant 27 : i32
    %57 = arith.addi %c27_i32, %56 : i32
    %c0_i32_42 = arith.constant 0 : i32
    %58 = arith.addi %57, %c0_i32_42 : i32
    %c0_43 = arith.constant 0 : index
    %59 = arith.index_cast %58 : i32 to index
    %c0_44 = arith.constant 0 : index
    %c0_45 = arith.constant 0 : index
    %60 = vector.load %arg2[%c0_43, %59, %c0_44, %c0_45] : memref<1x36x9x4xbf16, #tpu.memory_space<vmem>>, vector<1x8x8x4xbf16>
    %61 = vector.shape_cast %60 : vector<1x8x8x4xbf16> to vector<8x8x4xbf16>
    %62 = vector.shape_cast %61 : vector<8x8x4xbf16> to vector<64x4xbf16>
    %c5 = arith.constant 5 : index
    %c0_46 = arith.constant 0 : index
    %c0_47 = arith.constant 0 : index
    %63 = vector.load %arg3[%c5, %c0_46, %c0_47] : memref<16x4x8xbf16, #tpu.memory_space<vmem>>, vector<1x4x8xbf16>
    %64 = vector.shape_cast %63 : vector<1x4x8xbf16> to vector<4x8xbf16>
    %cst_48 = arith.constant dense<0.000000e+00> : vector<64x8xf32>
    %65 = tpu.matmul %62, %64, %cst_48 {dimension_numbers = #tpu.dot_dimension_numbers<[1], [0], [0], [1], [0, 0, 1, 1], [], []>} : vector<64x4xbf16>, vector<4x8xbf16>, vector<64x8xf32> -> vector<64x8xf32>
    %66 = arith.addf %55, %65 : vector<64x8xf32>
    %c8_i32_49 = arith.constant 8 : i32
    %67 = arith.muli %arg1, %c8_i32_49 : i32
    %c18_i32_50 = arith.constant 18 : i32
    %68 = arith.addi %c18_i32_50, %67 : i32
    %c0_i32_51 = arith.constant 0 : i32
    %69 = arith.addi %68, %c0_i32_51 : i32
    %c0_52 = arith.constant 0 : index
    %70 = arith.index_cast %69 : i32 to index
    %c1_53 = arith.constant 1 : index
    %c0_54 = arith.constant 0 : index
    %71 = vector.load %arg2[%c0_52, %70, %c1_53, %c0_54] : memref<1x36x9x4xbf16, #tpu.memory_space<vmem>>, vector<1x8x8x4xbf16>
    %72 = vector.shape_cast %71 : vector<1x8x8x4xbf16> to vector<8x8x4xbf16>
    %73 = vector.shape_cast %72 : vector<8x8x4xbf16> to vector<64x4xbf16>
    %c6 = arith.constant 6 : index
    %c0_55 = arith.constant 0 : index
    %c0_56 = arith.constant 0 : index
    %74 = vector.load %arg3[%c6, %c0_55, %c0_56] : memref<16x4x8xbf16, #tpu.memory_space<vmem>>, vector<1x4x8xbf16>
    %75 = vector.shape_cast %74 : vector<1x4x8xbf16> to vector<4x8xbf16>
    %cst_57 = arith.constant dense<0.000000e+00> : vector<64x8xf32>
    %76 = tpu.matmul %73, %75, %cst_57 {dimension_numbers = #tpu.dot_dimension_numbers<[1], [0], [0], [1], [0, 0, 1, 1], [], []>} : vector<64x4xbf16>, vector<4x8xbf16>, vector<64x8xf32> -> vector<64x8xf32>
    %77 = arith.addf %66, %76 : vector<64x8xf32>
    %c8_i32_58 = arith.constant 8 : i32
    %78 = arith.muli %arg1, %c8_i32_58 : i32
    %c27_i32_59 = arith.constant 27 : i32
    %79 = arith.addi %c27_i32_59, %78 : i32
    %c0_i32_60 = arith.constant 0 : i32
    %80 = arith.addi %79, %c0_i32_60 : i32
    %c0_61 = arith.constant 0 : index
    %81 = arith.index_cast %80 : i32 to index
    %c1_62 = arith.constant 1 : index
    %c0_63 = arith.constant 0 : index
    %82 = vector.load %arg2[%c0_61, %81, %c1_62, %c0_63] : memref<1x36x9x4xbf16, #tpu.memory_space<vmem>>, vector<1x8x8x4xbf16>
    %83 = vector.shape_cast %82 : vector<1x8x8x4xbf16> to vector<8x8x4xbf16>
    %84 = vector.shape_cast %83 : vector<8x8x4xbf16> to vector<64x4xbf16>
    %c7 = arith.constant 7 : index
    %c0_64 = arith.constant 0 : index
    %c0_65 = arith.constant 0 : index
    %85 = vector.load %arg3[%c7, %c0_64, %c0_65] : memref<16x4x8xbf16, #tpu.memory_space<vmem>>, vector<1x4x8xbf16>
    %86 = vector.shape_cast %85 : vector<1x4x8xbf16> to vector<4x8xbf16>
    %cst_66 = arith.constant dense<0.000000e+00> : vector<64x8xf32>
    %87 = tpu.matmul %84, %86, %cst_66 {dimension_numbers = #tpu.dot_dimension_numbers<[1], [0], [0], [1], [0, 0, 1, 1], [], []>} : vector<64x4xbf16>, vector<4x8xbf16>, vector<64x8xf32> -> vector<64x8xf32>
    %88 = arith.addf %77, %87 : vector<64x8xf32>
    %c8_i32_67 = arith.constant 8 : i32
    %89 = arith.muli %arg1, %c8_i32_67 : i32
    %c0_i32_68 = arith.constant 0 : i32
    %90 = arith.addi %c0_i32_68, %89 : i32
    %c1_i32 = arith.constant 1 : i32
    %91 = arith.addi %90, %c1_i32 : i32
    %c0_69 = arith.constant 0 : index
    %92 = arith.index_cast %91 : i32 to index
    %c0_70 = arith.constant 0 : index
    %c0_71 = arith.constant 0 : index
    %93 = vector.load %arg2[%c0_69, %92, %c0_70, %c0_71] : memref<1x36x9x4xbf16, #tpu.memory_space<vmem>>, vector<1x8x8x4xbf16>
    %94 = vector.shape_cast %93 : vector<1x8x8x4xbf16> to vector<8x8x4xbf16>
    %95 = vector.shape_cast %94 : vector<8x8x4xbf16> to vector<64x4xbf16>
    %c8 = arith.constant 8 : index
    %c0_72 = arith.constant 0 : index
    %c0_73 = arith.constant 0 : index
    %96 = vector.load %arg3[%c8, %c0_72, %c0_73] : memref<16x4x8xbf16, #tpu.memory_space<vmem>>, vector<1x4x8xbf16>
    %97 = vector.shape_cast %96 : vector<1x4x8xbf16> to vector<4x8xbf16>
    %cst_74 = arith.constant dense<0.000000e+00> : vector<64x8xf32>
    %98 = tpu.matmul %95, %97, %cst_74 {dimension_numbers = #tpu.dot_dimension_numbers<[1], [0], [0], [1], [0, 0, 1, 1], [], []>} : vector<64x4xbf16>, vector<4x8xbf16>, vector<64x8xf32> -> vector<64x8xf32>
    %99 = arith.addf %88, %98 : vector<64x8xf32>
    %c8_i32_75 = arith.constant 8 : i32
    %100 = arith.muli %arg1, %c8_i32_75 : i32
    %c9_i32_76 = arith.constant 9 : i32
    %101 = arith.addi %c9_i32_76, %100 : i32
    %c1_i32_77 = arith.constant 1 : i32
    %102 = arith.addi %101, %c1_i32_77 : i32
    %c0_78 = arith.constant 0 : index
    %103 = arith.index_cast %102 : i32 to index
    %c0_79 = arith.constant 0 : index
    %c0_80 = arith.constant 0 : index
    %104 = vector.load %arg2[%c0_78, %103, %c0_79, %c0_80] : memref<1x36x9x4xbf16, #tpu.memory_space<vmem>>, vector<1x8x8x4xbf16>
    %105 = vector.shape_cast %104 : vector<1x8x8x4xbf16> to vector<8x8x4xbf16>
    %106 = vector.shape_cast %105 : vector<8x8x4xbf16> to vector<64x4xbf16>
    %c9 = arith.constant 9 : index
    %c0_81 = arith.constant 0 : index
    %c0_82 = arith.constant 0 : index
    %107 = vector.load %arg3[%c9, %c0_81, %c0_82] : memref<16x4x8xbf16, #tpu.memory_space<vmem>>, vector<1x4x8xbf16>
    %108 = vector.shape_cast %107 : vector<1x4x8xbf16> to vector<4x8xbf16>
    %cst_83 = arith.constant dense<0.000000e+00> : vector<64x8xf32>
    %109 = tpu.matmul %106, %108, %cst_83 {dimension_numbers = #tpu.dot_dimension_numbers<[1], [0], [0], [1], [0, 0, 1, 1], [], []>} : vector<64x4xbf16>, vector<4x8xbf16>, vector<64x8xf32> -> vector<64x8xf32>
    %110 = arith.addf %99, %109 : vector<64x8xf32>
    %c8_i32_84 = arith.constant 8 : i32
    %111 = arith.muli %arg1, %c8_i32_84 : i32
    %c0_i32_85 = arith.constant 0 : i32
    %112 = arith.addi %c0_i32_85, %111 : i32
    %c1_i32_86 = arith.constant 1 : i32
    %113 = arith.addi %112, %c1_i32_86 : i32
    %c0_87 = arith.constant 0 : index
    %114 = arith.index_cast %113 : i32 to index
    %c1_88 = arith.constant 1 : index
    %c0_89 = arith.constant 0 : index
    %115 = vector.load %arg2[%c0_87, %114, %c1_88, %c0_89] : memref<1x36x9x4xbf16, #tpu.memory_space<vmem>>, vector<1x8x8x4xbf16>
    %116 = vector.shape_cast %115 : vector<1x8x8x4xbf16> to vector<8x8x4xbf16>
    %117 = vector.shape_cast %116 : vector<8x8x4xbf16> to vector<64x4xbf16>
    %c10 = arith.constant 10 : index
    %c0_90 = arith.constant 0 : index
    %c0_91 = arith.constant 0 : index
    %118 = vector.load %arg3[%c10, %c0_90, %c0_91] : memref<16x4x8xbf16, #tpu.memory_space<vmem>>, vector<1x4x8xbf16>
    %119 = vector.shape_cast %118 : vector<1x4x8xbf16> to vector<4x8xbf16>
    %cst_92 = arith.constant dense<0.000000e+00> : vector<64x8xf32>
    %120 = tpu.matmul %117, %119, %cst_92 {dimension_numbers = #tpu.dot_dimension_numbers<[1], [0], [0], [1], [0, 0, 1, 1], [], []>} : vector<64x4xbf16>, vector<4x8xbf16>, vector<64x8xf32> -> vector<64x8xf32>
    %121 = arith.addf %110, %120 : vector<64x8xf32>
    %c8_i32_93 = arith.constant 8 : i32
    %122 = arith.muli %arg1, %c8_i32_93 : i32
    %c9_i32_94 = arith.constant 9 : i32
    %123 = arith.addi %c9_i32_94, %122 : i32
    %c1_i32_95 = arith.constant 1 : i32
    %124 = arith.addi %123, %c1_i32_95 : i32
    %c0_96 = arith.constant 0 : index
    %125 = arith.index_cast %124 : i32 to index
    %c1_97 = arith.constant 1 : index
    %c0_98 = arith.constant 0 : index
    %126 = vector.load %arg2[%c0_96, %125, %c1_97, %c0_98] : memref<1x36x9x4xbf16, #tpu.memory_space<vmem>>, vector<1x8x8x4xbf16>
    %127 = vector.shape_cast %126 : vector<1x8x8x4xbf16> to vector<8x8x4xbf16>
    %128 = vector.shape_cast %127 : vector<8x8x4xbf16> to vector<64x4xbf16>
    %c11 = arith.constant 11 : index
    %c0_99 = arith.constant 0 : index
    %c0_100 = arith.constant 0 : index
    %129 = vector.load %arg3[%c11, %c0_99, %c0_100] : memref<16x4x8xbf16, #tpu.memory_space<vmem>>, vector<1x4x8xbf16>
    %130 = vector.shape_cast %129 : vector<1x4x8xbf16> to vector<4x8xbf16>
    %cst_101 = arith.constant dense<0.000000e+00> : vector<64x8xf32>
    %131 = tpu.matmul %128, %130, %cst_101 {dimension_numbers = #tpu.dot_dimension_numbers<[1], [0], [0], [1], [0, 0, 1, 1], [], []>} : vector<64x4xbf16>, vector<4x8xbf16>, vector<64x8xf32> -> vector<64x8xf32>
    %132 = arith.addf %121, %131 : vector<64x8xf32>
    %c8_i32_102 = arith.constant 8 : i32
    %133 = arith.muli %arg1, %c8_i32_102 : i32
    %c18_i32_103 = arith.constant 18 : i32
    %134 = arith.addi %c18_i32_103, %133 : i32
    %c1_i32_104 = arith.constant 1 : i32
    %135 = arith.addi %134, %c1_i32_104 : i32
    %c0_105 = arith.constant 0 : index
    %136 = arith.index_cast %135 : i32 to index
    %c0_106 = arith.constant 0 : index
    %c0_107 = arith.constant 0 : index
    %137 = vector.load %arg2[%c0_105, %136, %c0_106, %c0_107] : memref<1x36x9x4xbf16, #tpu.memory_space<vmem>>, vector<1x8x8x4xbf16>
    %138 = vector.shape_cast %137 : vector<1x8x8x4xbf16> to vector<8x8x4xbf16>
    %139 = vector.shape_cast %138 : vector<8x8x4xbf16> to vector<64x4xbf16>
    %c12 = arith.constant 12 : index
    %c0_108 = arith.constant 0 : index
    %c0_109 = arith.constant 0 : index
    %140 = vector.load %arg3[%c12, %c0_108, %c0_109] : memref<16x4x8xbf16, #tpu.memory_space<vmem>>, vector<1x4x8xbf16>
    %141 = vector.shape_cast %140 : vector<1x4x8xbf16> to vector<4x8xbf16>
    %cst_110 = arith.constant dense<0.000000e+00> : vector<64x8xf32>
    %142 = tpu.matmul %139, %141, %cst_110 {dimension_numbers = #tpu.dot_dimension_numbers<[1], [0], [0], [1], [0, 0, 1, 1], [], []>} : vector<64x4xbf16>, vector<4x8xbf16>, vector<64x8xf32> -> vector<64x8xf32>
    %143 = arith.addf %132, %142 : vector<64x8xf32>
    %c8_i32_111 = arith.constant 8 : i32
    %144 = arith.muli %arg1, %c8_i32_111 : i32
    %c27_i32_112 = arith.constant 27 : i32
    %145 = arith.addi %c27_i32_112, %144 : i32
    %c1_i32_113 = arith.constant 1 : i32
    %146 = arith.addi %145, %c1_i32_113 : i32
    %c0_114 = arith.constant 0 : index
    %147 = arith.index_cast %146 : i32 to index
    %c0_115 = arith.constant 0 : index
    %c0_116 = arith.constant 0 : index
    %148 = vector.load %arg2[%c0_114, %147, %c0_115, %c0_116] : memref<1x36x9x4xbf16, #tpu.memory_space<vmem>>, vector<1x8x8x4xbf16>
    %149 = vector.shape_cast %148 : vector<1x8x8x4xbf16> to vector<8x8x4xbf16>
    %150 = vector.shape_cast %149 : vector<8x8x4xbf16> to vector<64x4xbf16>
    %c13 = arith.constant 13 : index
    %c0_117 = arith.constant 0 : index
    %c0_118 = arith.constant 0 : index
    %151 = vector.load %arg3[%c13, %c0_117, %c0_118] : memref<16x4x8xbf16, #tpu.memory_space<vmem>>, vector<1x4x8xbf16>
    %152 = vector.shape_cast %151 : vector<1x4x8xbf16> to vector<4x8xbf16>
    %cst_119 = arith.constant dense<0.000000e+00> : vector<64x8xf32>
    %153 = tpu.matmul %150, %152, %cst_119 {dimension_numbers = #tpu.dot_dimension_numbers<[1], [0], [0], [1], [0, 0, 1, 1], [], []>} : vector<64x4xbf16>, vector<4x8xbf16>, vector<64x8xf32> -> vector<64x8xf32>
    %154 = arith.addf %143, %153 : vector<64x8xf32>
    %c8_i32_120 = arith.constant 8 : i32
    %155 = arith.muli %arg1, %c8_i32_120 : i32
    %c18_i32_121 = arith.constant 18 : i32
    %156 = arith.addi %c18_i32_121, %155 : i32
    %c1_i32_122 = arith.constant 1 : i32
    %157 = arith.addi %156, %c1_i32_122 : i32
    %c0_123 = arith.constant 0 : index
    %158 = arith.index_cast %157 : i32 to index
    %c1_124 = arith.constant 1 : index
    %c0_125 = arith.constant 0 : index
    %159 = vector.load %arg2[%c0_123, %158, %c1_124, %c0_125] : memref<1x36x9x4xbf16, #tpu.memory_space<vmem>>, vector<1x8x8x4xbf16>
    %160 = vector.shape_cast %159 : vector<1x8x8x4xbf16> to vector<8x8x4xbf16>
    %161 = vector.shape_cast %160 : vector<8x8x4xbf16> to vector<64x4xbf16>
    %c14 = arith.constant 14 : index
    %c0_126 = arith.constant 0 : index
    %c0_127 = arith.constant 0 : index
    %162 = vector.load %arg3[%c14, %c0_126, %c0_127] : memref<16x4x8xbf16, #tpu.memory_space<vmem>>, vector<1x4x8xbf16>
    %163 = vector.shape_cast %162 : vector<1x4x8xbf16> to vector<4x8xbf16>
    %cst_128 = arith.constant dense<0.000000e+00> : vector<64x8xf32>
    %164 = tpu.matmul %161, %163, %cst_128 {dimension_numbers = #tpu.dot_dimension_numbers<[1], [0], [0], [1], [0, 0, 1, 1], [], []>} : vector<64x4xbf16>, vector<4x8xbf16>, vector<64x8xf32> -> vector<64x8xf32>
    %165 = arith.addf %154, %164 : vector<64x8xf32>
    %c8_i32_129 = arith.constant 8 : i32
    %166 = arith.muli %arg1, %c8_i32_129 : i32
    %c27_i32_130 = arith.constant 27 : i32
    %167 = arith.addi %c27_i32_130, %166 : i32
    %c1_i32_131 = arith.constant 1 : i32
    %168 = arith.addi %167, %c1_i32_131 : i32
    %c0_132 = arith.constant 0 : index
    %169 = arith.index_cast %168 : i32 to index
    %c1_133 = arith.constant 1 : index
    %c0_134 = arith.constant 0 : index
    %170 = vector.load %arg2[%c0_132, %169, %c1_133, %c0_134] : memref<1x36x9x4xbf16, #tpu.memory_space<vmem>>, vector<1x8x8x4xbf16>
    %171 = vector.shape_cast %170 : vector<1x8x8x4xbf16> to vector<8x8x4xbf16>
    %172 = vector.shape_cast %171 : vector<8x8x4xbf16> to vector<64x4xbf16>
    %c15 = arith.constant 15 : index
    %c0_135 = arith.constant 0 : index
    %c0_136 = arith.constant 0 : index
    %173 = vector.load %arg3[%c15, %c0_135, %c0_136] : memref<16x4x8xbf16, #tpu.memory_space<vmem>>, vector<1x4x8xbf16>
    %174 = vector.shape_cast %173 : vector<1x4x8xbf16> to vector<4x8xbf16>
    %cst_137 = arith.constant dense<0.000000e+00> : vector<64x8xf32>
    %175 = tpu.matmul %172, %174, %cst_137 {dimension_numbers = #tpu.dot_dimension_numbers<[1], [0], [0], [1], [0, 0, 1, 1], [], []>} : vector<64x4xbf16>, vector<4x8xbf16>, vector<64x8xf32> -> vector<64x8xf32>
    %176 = arith.addf %165, %175 : vector<64x8xf32>
    %177 = vector.shape_cast %176 : vector<64x8xf32> to vector<8x8x8xf32>
    %178 = vector.shape_cast %177 : vector<8x8x8xf32> to vector<1x8x8x8xf32>
    %c0_138 = arith.constant 0 : index
    %c0_139 = arith.constant 0 : index
    %c0_140 = arith.constant 0 : index
    %c0_141 = arith.constant 0 : index
    %179 = vector.load %arg4[%c0_138, %c0_139, %c0_140, %c0_141] : memref<1x8x8x8xf32, #tpu.memory_space<vmem>>, vector<1x8x8x8xf32>
    tpu.vector_store %arg4[%c0_138, %c0_139, %c0_140, %c0_141], %178 {strides = array<i32>} : memref<1x8x8x8xf32, #tpu.memory_space<vmem>>, vector<1x8x8x8xf32>,
    %180 = tpu.iota {dimensions = array<i32: 0>} : vector<8x1x1xi32>
    %c8_i32_142 = arith.constant 8 : i32
    %181 = arith.muli %arg1, %c8_i32_142 : i32
    %182 = vector.broadcast %181 : i32 to vector<8x1x1xi32>
    %183 = arith.addi %180, %182 : vector<8x1x1xi32>
    %c8_i32_143 = arith.constant 8 : i32
    %184 = vector.broadcast %c8_i32_143 : i32 to vector<8x1x1xi32>
    %185 = arith.cmpi slt, %183, %184 : vector<8x1x1xi32>
    %cst_144 = arith.constant 0.000000e+00 : f32
    %186 = vector.shape_cast %185 : vector<8x1x1xi1> to vector<8x1x1xi1>
    %187 = vector.broadcast %186 : vector<8x1x1xi1> to vector<8x8x8xi1>
    %188 = vector.broadcast %cst_144 : f32 to vector<8x8x8xf32>
    %189 = arith.select %187, %177, %188 : vector<8x8x8xi1>, vector<8x8x8xf32>
    %cst_145 = arith.constant dense<0.000000e+00> : vector<8xf32>
    %190 = vector.multi_reduction <add>, %189, %cst_145 [0, 1] : vector<8x8x8xf32> to vector<8xf32>
    %191 = vector.shape_cast %190 : vector<8xf32> to vector<1x1x1x8xf32>
    %c0_146 = arith.constant 0 : index
    %c0_147 = arith.constant 0 : index
    %c0_148 = arith.constant 0 : index
    %c0_149 = arith.constant 0 : index
    %192 = vector.load %arg5[%c0_146, %c0_147, %c0_148, %c0_149] : memref<1x1x1x8xf32, #tpu.memory_space<vmem>>, vector<1x1x1x8xf32>
    tpu.vector_store %arg5[%c0_146, %c0_147, %c0_148, %c0_149], %191 {strides = array<i32>} : memref<1x1x1x8xf32, #tpu.memory_space<vmem>>, vector<1x1x1x8xf32>,
    %193 = arith.mulf %189, %189 : vector<8x8x8xf32>
    %cst_150 = arith.constant dense<0.000000e+00> : vector<8xf32>
    %194 = vector.multi_reduction <add>, %193, %cst_150 [0, 1] : vector<8x8x8xf32> to vector<8xf32>
    %195 = vector.shape_cast %194 : vector<8xf32> to vector<1x1x1x8xf32>
    %c0_151 = arith.constant 0 : index
    %c0_152 = arith.constant 0 : index
    %c0_153 = arith.constant 0 : index
    %c0_154 = arith.constant 0 : index
    %196 = vector.load %arg6[%c0_151, %c0_152, %c0_153, %c0_154] : memref<1x1x1x8xf32, #tpu.memory_space<vmem>>, vector<1x1x1x8xf32>
    tpu.vector_store %arg6[%c0_151, %c0_152, %c0_153, %c0_154], %195 {strides = array<i32>} : memref<1x1x1x8xf32, #tpu.memory_space<vmem>>, vector<1x1x1x8xf32>,
    return
  }
  func.func @transform_0(%arg0: i32, %arg1: i32) -> (i32, i32, i32, i32) {
    %c0_i32 = arith.constant 0 : i32
    %c0_i32_0 = arith.constant 0 : i32
    %c0_i32_1 = arith.constant 0 : i32
    %c0_i32_2 = arith.constant 0 : i32
    return %arg0, %c0_i32, %c0_i32_0, %c0_i32_1 : i32, i32, i32, i32
  }
  func.func @transform_1(%arg0: i32, %arg1: i32) -> (i32, i32, i32) {
    %c0_i32 = arith.constant 0 : i32
    %c0_i32_0 = arith.constant 0 : i32
    %c0_i32_1 = arith.constant 0 : i32
    %c0_i32_2 = arith.constant 0 : i32
    return %c0_i32, %c0_i32_0, %c0_i32_1 : i32, i32, i32
  }
  func.func @transform_2(%arg0: i32, %arg1: i32) -> (i32, i32, i32, i32) {
    %c0_i32 = arith.constant 0 : i32
    %c0_i32_0 = arith.constant 0 : i32
    %c0_i32_1 = arith.constant 0 : i32
    return %arg0, %arg1, %c0_i32, %c0_i32_0 : i32, i32, i32, i32
  }
  func.func @transform_3(%arg0: i32, %arg1: i32) -> (i32, i32, i32, i32) {
    %c0_i32 = arith.constant 0 : i32
    %c0_i32_0 = arith.constant 0 : i32
    %c0_i32_1 = arith.constant 0 : i32
    return %arg0, %arg1, %c0_i32, %c0_i32_0 : i32, i32, i32, i32
  }
  func.func @transform_4(%arg0: i32, %arg1: i32) -> (i32, i32, i32, i32) {
    %c0_i32 = arith.constant 0 : i32
    %c0_i32_0 = arith.constant 0 : i32
    %c0_i32_1 = arith.constant 0 : i32
    return %arg0, %arg1, %c0_i32, %c0_i32_0 : i32, i32, i32, i32
  }
}

</mosaic_0001>

<bundles_post_ra>
// kernel: conv2d_block_pallas.1
= control target key start
LH: loop header
LB: loop body
LE: loop exit
PB: predicated region body
PF: predicated region fallthrough
CT: control target
= control target key end

     0   :  { %10 = vsyncpa [#allocation3], 0  ;;  %s5218_s0 = inlined_call_operand.hbm [shape: bf16[2,36,9,4], index: 0, kind: input, shape index: {}]   ;;  %s5219_s1 = inlined_call_operand.hbm [shape: bf16[16,4,8], index: 1, kind: input, shape index: {}]   ;;  %s5220_s2 = inlined_call_operand.hbm [shape: f32[2,8,8,8], index: 2, kind: output, shape index: {0}]   ;;  %s5221_s3 = inlined_call_operand.hbm [shape: f32[2,1,1,8], index: 3, kind: output, shape index: {1}]   ;;  %s5222_s4 = inlined_call_operand.hbm [shape: f32[2,1,1,8], index: 4, kind: output, shape index: {2}]  }
   0x1   :  { %12 = vsyncpa [#allocation3 + $0x1], 0 }
   0x2   :  { %13 = vsyncpa [#allocation6], 0 }
   0x3   :  { %14 = vsyncpa [#allocation4], 0 }
   0x4   :  { %16 = vsyncpa [#allocation4 + $0x1], 0 }
   0x5   :  { %17 = vsyncpa [#allocation9], 0 }
   0x6   :  { %19 = vsyncpa [#allocation9 + $0x1], 0  ;;  %s4459_s15 = smov 0   ;;  %s4461_s16 = smov 0  }
   0x7   :  { %s4463_s17 = smov 0   ;;  %s4465_s18 = smov 0  }
   0x8   :  { %s4467_s19 = smov 0   ;;  %s4469_s20 = smov 0  }
   0x9 LB: > { %s4490_s21 = sadd.s32 4294967295, %s4421_s20   ;;  %s3405_s22 = sadd.s32 4294967294, %s4421_s20   ;;  %s4421_s20 = sphi %s4469_s20, %s25_s20   ;;  %s4417_s19 = sphi %s4467_s19, %s5245_s19   ;;  %s4413_s18 = sphi %s4465_s18, %s5244_s18   ;;  %s4409_s17 = sphi %s4463_s17, %s5243_s17   ;;  %s4405_s16 = sphi %s4461_s16, %s5242_s16   ;;  %s4401_s15 = sphi %s4459_s15, %s5241_s15  }
   0xa   : > { %p57_p0 = scmp.ne.s32.totalorder %s4405_s16, %s4401_s15  ;;  %p5223_p1 = scmp.eq.s32.totalorder %s4490_s21, 0 }
   0xb   : > { %p110_p3 = scmp.eq.s32.totalorder %s3405_s22, 1  ;;  %p3406_p5 = scmp.ge.s32.totalorder %s4421_s20, 1 }
   0xc   : > { %p4501_p4 = por %p5223_p1, %p57_p0  ;;  %p173_p7 = scmp.lt.s32.totalorder %s4421_s20, 3 }
   0xd   : > { %p4506_p6 = por %p110_p3, %p57_p0  ;;  %s4423_s26 = smov [#allocation5]  }
   0xe   : > { %s5226_s23 = scalar_select %p4501_p4, 1, 0 }
   0xf   : > { %s5227_s24 = scalar_select %p4506_p6, 1, 0 }
  0x10   : > { %p4511_p8 = pnand %p3406_p5, %p173_p7  ;;  %s185_s27 = sshll.u32 %s4423_s26, 4  ;;  %s186_s27 = int_to_ptr.vmem [resolvable:$true] %s185_s27 }
  0x11   : > { %s37_s29 = sadd.s32 1, %s4417_s19  ;;  %s4217_s6 = scalar_lea.hbm %s5219_s1, 512 }
  0x12   : > { %s5228_s25 = scalar_select %p4511_p8, 1, 0 }
  0x13   : > { %p4108_p9 = pneg %p4511_p8  ;;  %p4218_p12 = scmp.ne.s32.totalorder %s5219_s1, %s4217_s6 }
  0x14   : > { %p4224_p5 = scmp.lt.u32.totalorder %s4217_s6, %s5219_s1 }
  0x15   : > { %p4520_p11 = pnand %p4108_p9, %p5223_p1 }
  0x17   : > { %p4219_p13 = pneg %p4520_p11 }
  0x19   : > { %p4220_p0 = pnand %p4219_p13, %p4218_p12 }
  0x1b   : > { %p4221_p3 = pneg %p4220_p0 }
  0x1d   : > { %p4226_p7 = pnand %p4224_p5, %p4221_p3 }
  0x1f   : > { %4229 = shalt.err (!%p4226_p7)
}
  0x20   : > { %s4230_s11 = scalar_lea.vmem %s186_s27, 512  ;;  %p4238_p2 = scmp.lt.s32.totalorder %s186_s27, %s186_s27 }
  0x21   : > { %p4231_p9 = scmp.ne.s32.totalorder %s186_s27, %s4230_s11  ;;  %p4239_p6 = scmp.lt.s32.totalorder %s4230_s11, %s4230_s11 }
  0x23   : > { %p4233_p10 = pnand %p4231_p9, %p4219_p13  ;;  %p4240_p4 = por %p4239_p6, %p4238_p2 }
  0x25   : > { %p4234_p1 = pneg %p4233_p10 }
  0x27   : > { %p4241_p8 = pnand %p4240_p4, %p4234_p1 }
  0x29   : > { %4244 = shalt.err (!%p4241_p8)
}
  0x2a   : > { %s4424_s12 = smov 32   ;;  %s4425_s13 = smov 2  }
  0x2b   : > { %4111 = dma.hbm_to_vmem [thread:$0]  (!%p4520_p11), %s5219_s1, 512, %s186_s27, [#allocation6], %s4424_s12, %s4424_s12, %s4425_s13  }
  0x2c   : > { %p39_p1 = scmp.ge.s32.totalorder %s37_s29, 2  ;;  %s44_s30 = sadd.s32 1, %s4409_s17 }
  0x2d   : > { %p51_p2 = scmp.ne.s32.totalorder %s4409_s17, %s4405_s16  ;;  %p52_p4 = scmp.eq.s32.totalorder %s4421_s20, 0 }
  0x2e   : > { %s5247_s29 = smov (%p39_p1, %s37_s29), 0  ;;  %p5230_p8 = scmp.eq.s32.totalorder %s4490_s21, 1 }
  0x2f   : > { %p53_p6 = por %p52_p4, %p51_p2  ;;  %s41_s6 = ssub.s32 %s4417_s19, %s5247_s29 }
  0x30   : > { %p4549_p10 = por %p5230_p8, %p51_p2  ;;  %p4127_p12 = scmp.lt.s32.totalorder %s4421_s20, 2 }
  0x31   : > { %p42_p13 = scmp.eq.s32.totalorder %s41_s6, 0  ;;  %s199_s28 = sand.u32 1, %s4409_s17  }
  0x32   : > { %s4093_s7 = smul.u32 288, %s199_s28  ;;  %p4561_p11 = pnand %p4127_p12, %p53_p6 }
  0x33   : > { %s4558_s8 = scalar_select %p42_p13, %s4409_s17, %s44_s30  }
  0x34   : > { %s4094_s27 = smul.u32 4608, %s4417_s19  ;;  %s203_s9 = scalar_lea.vmem [#allocation2], %s4093_s7 }
  0x35   : > { %s210_s10 = sshll.u32 %s203_s9, 4  ;;  %s4572_s26 = scalar_lea.sflag [#allocation3], %s199_s28  ;;  %s4570_s10 = int_to_ptr.vmem [resolvable:$true] %s210_s10 }
  0x36   : > { %s4568_s14 = scalar_lea.hbm %s5218_s0, %s4094_s27  ;;  %p4247_p3 = pneg %p4561_p11 }
  0x37   : > { %s4245_s30 = scalar_lea.hbm %s4568_s14, 4608  ;;  %s4250_s27 = scalar_lea.hbm %s5218_s0, 9216 }
  0x38   : > { %p4246_p0 = scmp.ne.s32.totalorder %s4568_s14, %s4245_s30  ;;  %p4251_p9 = scmp.lt.u32.totalorder %s4568_s14, %s5218_s0 }
  0x39   : > { %p4252_p1 = scmp.lt.u32.totalorder %s4250_s27, %s4245_s30  ;;  %p4254_p4 = scmp.lt.u32.totalorder %s4245_s30, %s4568_s14 }
  0x3a   : > { %p4248_p5 = pnand %p4247_p3, %p4246_p0 }
  0x3b   : > { %p4253_p2 = por %p4252_p1, %p4251_p9 }
  0x3c   : > { %p4249_p7 = pneg %p4248_p5 }
  0x3d   : > { %p4255_p6 = por %p4254_p4, %p4253_p2 }
  0x3f   : > { %p4256_p8 = pnand %p4255_p6, %p4249_p7 }
  0x41   : > { %4259 = shalt.err (!%p4256_p8)
}
  0x42   : > { %s4260_s28 = scalar_lea.vmem %s4570_s10, 4608  ;;  %s4426_s13 = smov [#allocation2]  }
  0x43   : > { %p4261_p12 = scmp.ne.s32.totalorder %s4570_s10, %s4260_s28  ;;  %s4265_s6 = sshll.u32 %s4426_s13, 4  ;;  %s4266_s6 = int_to_ptr.vmem [resolvable:$false] %s4265_s6 }
  0x44   : > { %s4267_s7 = scalar_lea.vmem %s4266_s6, 9216  ;;  %p4268_p5 = scmp.lt.s32.totalorder %s4570_s10, %s4266_s6 }
  0x45   : > { %p4263_p13 = pnand %p4261_p12, %p4247_p3  ;;  %p4269_p9 = scmp.lt.s32.totalorder %s4267_s7, %s4260_s28 }
  0x47   : > { %p4264_p0 = pneg %p4263_p13  ;;  %p4270_p1 = por %p4269_p9, %p4268_p5 }
  0x49   : > { %p4271_p2 = pnand %p4270_p1, %p4264_p0 }
  0x4b   : > { %4274 = shalt.err (!%p4271_p2)
}
  0x4c   : > { %s4427_s30 = smov 64   ;;  %s4428_s27 = smov 4  }
  0x4d   : > { %4115 = dma.hbm_to_vmem [thread:$0]  (!%p4561_p11), %s4568_s14, 4608, %s4570_s10, %s4572_s26, %s4427_s30, %s4427_s30, %s4428_s27  }
  0x4e   : > { %p5233_p3 = scmp.ne.s32.totalorder %s5228_s25, 0 }
  0x4f   : > { %s4603_s9 = sand.u32 (!%p5233_p3), 1, %s4405_s16   ;;  %p5234_p7 = scmp.ne.s32.totalorder (!%p5233_p3), %s5226_s23, 0 }
  0x50   : > { %222 = sbr.rel (%p5233_p3) target bundleno = 547 (0x223), region = 28  ;;  %s225_s28 = scalar_lea.sflag (!%p5233_p3), [#allocation3], %s4603_s9 }
  0x51   : > { %s4095_s12 = smul.u32 (!%p5233_p3), 288, %s4603_s9 }
  0x53   : > { %s4607_s13 = scalar_lea.vmem (!%p5233_p3), [#allocation2], %s4095_s12 }
  0x57   : > { %4384 = dma.done.wait (%p5234_p7), %s225_s28, 4608  }
  0x58   : > { %4386 = vsyncadd (%p5234_p7), %s225_s28, 4294962688  ;;  %p5235_p11 = scmp.eq.s32.totalorder %s4490_s21, 0 }
  0x5a   : > { %4388 = dma.done.wait (%p5235_p11), [#allocation6], 512   ;;  %p5236_p4 = pmov %p5235_p11 }
  0x5b   : > { %vm327_vm0 = vcmask 1041408   ;;  %vm314_vm1 = vcmask 31744   ;;  %v293_v0 = vld [vmem:[#allocation5 + $0x2] sm:$0x3]  ;;  %v1676_v1 = vld [vmem:[#allocation5 + $0x10] sm:$0x3] }
  0x5c   : > { %4390 = vsyncadd (%p5236_p4), [#allocation6], 4294966784  ;;  %4077 = vmatprep.subr.msk.bf16.mxu1 %vm327_vm0, %v293_v0  ;;  %4085 = vmatprep.subr.msk.bf16.mxu0 %vm327_vm0, %v1676_v1  ;;  %v329_v2 = vsel %vm327_vm0, %v293_v0, 0  ;;  %v1710_v3 = vsel %vm327_vm0, %v1676_v1, 0  ;;  %v4185_v4 = vld [vmem:[%s4607_s13 + $0x48] ss:$8 sps:$4 sm:$0xff]  }
  0x5d   : > { %3798 = vmatpush3.bf16.msra.mxu1 %v329_v2  ;;  %3878 = vmatpush3.bf16.msra.mxu0 %v1710_v3  ;;  %v4186_v5 = vld [vmem:[%s4607_s13 + $0x8] ss:$8 sps:$4 sm:$0xff]   ;;  %v4187_v6 = vld [vmem:[%s4607_s13 + $0x58] ss:$8 sps:$4 sm:$0xff]   ;;  %v628_v18 = vld [vmem:[#allocation5 + $0x4] sm:$0x3] }
  0x5e   : > { %3799 = vmatprep.mubr.msk.bf16.mxu1 %vm314_vm1, %v4185_v4  ;;  %3879 = vmatprep.mubr.msk.bf16.mxu0 %vm314_vm1, %v4186_v5  ;;  %v279_v7 = vld [vmem:[#allocation5] sm:$0x3]  ;;  %v1798_v9 = vld [vmem:[#allocation5 + $0x12] sm:$0x3]  ;;  %v2036_v19 = vld [vmem:[#allocation5 + $0x14] sm:$0x3] }
  0x5f   : > { %4078 = vmatprep.subr.msk.bf16.mxu1 %vm327_vm0, %v279_v7  ;;  %v4188_v8 = vld [vmem:[%s4607_s13 + $0x18] ss:$8 sps:$4 sm:$0xff]   ;;  %v429_v10 = vsel %vm327_vm0, %v279_v7, 0  ;;  %4086 = vmatprep.subr.msk.bf16.mxu0 %vm327_vm0, %v1798_v9  ;;  %v1832_v11 = vsel %vm327_vm0, %v1798_v9, 0  ;;  %v4189_v12 = vld [vmem:[%s4607_s13 + $0x68] ss:$8 sps:$4 sm:$0xff]  }
  0x60   : > { %3800 = vmatmul.mubr.msk.bf16.vlgmr.msra.gmra.mrb[0].mxu1 %vm314_vm1, %v4187_v6  ;;  %3880 = vmatmul.mubr.msk.bf16.vlgmr.msra.gmra.mrb[0].mxu0 %vm314_vm1, %v4188_v8  ;;  %v4190_v13 = vld [vmem:[%s4607_s13 + $0x28] ss:$8 sps:$4 sm:$0xff]   ;;  %v4191_v14 = vld [vmem:[%s4607_s13 + $0x78] ss:$8 sps:$4 sm:$0xff]   ;;  %vm512_vm2 = vsmask.f32 3328 }
  0x61   : > { %3808 = vmatpush3.bf16.msra.mxu1 %v429_v10  ;;  %3888 = vmatpush3.bf16.msra.mxu0 %v1832_v11  ;;  %v4192_v15 = vld [vmem:[%s4607_s13 + $0x38] ss:$8 sps:$4 sm:$0xff]   ;;  %vm513_vm3 = vsmask.f32 7440  ;;  %v654_v22 = vsel %vm327_vm0, %v628_v18, 0  ;;  %v2062_v23 = vsel %vm327_vm0, %v2036_v19, 0 }
  0x62   : > { %3803 = vmatprep.mubr.msk.bf16.mxu1 %vm314_vm1, %v4189_v12  ;;  %3883 = vmatprep.mubr.msk.bf16.mxu0 %vm314_vm1, %v4190_v13  ;;  %v4193_v16 = vld [vmem:[%s4607_s13] ss:$8 sps:$4 sm:$0xff]   ;;  %v4194_v17 = vld [vmem:[%s4607_s13 + $0x50] ss:$8 sps:$4 sm:$0xff]   ;;  %v497_v27 = vld [vmem:[%s4607_s13 + $0x4] sm:$0x1] }
  0x63   : > { %4079 = vmatprep.subr.msk.bf16.mxu1 %vm327_vm0, %v628_v18  ;;  %4087 = vmatprep.subr.msk.bf16.mxu0 %vm327_vm0, %v2036_v19  ;;  %v4195_v20 = vld [vmem:[%s4607_s13 + $0x10] ss:$8 sps:$4 sm:$0xff]   ;;  %v4196_v21 = vld [vmem:[%s4607_s13 + $0x60] ss:$8 sps:$4 sm:$0xff]   ;;  %v499_v29 = vld [vmem:[%s4607_s13 + $0xc] sm:$0x1] }
  0x64   : > { %v4197_v24 = vld [vmem:[%s4607_s13 + $0x20] ss:$8 sps:$4 sm:$0xff]   ;;  %v4198_v25 = vld [vmem:[%s4607_s13 + $0x70] ss:$8 sps:$4 sm:$0xff]   ;;  %v525_v32 = vshll.u32 %v497_v27, 16  ;;  %v539_v35 = vshll.u32 %v499_v29, 16  ;;  %vm4669_vm4 = vmor %vm512_vm2, %vm513_vm3 }
  0x65   : > { %v496_v26 = vld [vmem:[%s4607_s13] sm:$0xf]  ;;  %v498_v28 = vld [vmem:[%s4607_s13 + $0x8] sm:$0xf]  ;;  %v3582_v39 = vld [vmem:[%s4607_s13 + $0xc] sm:$0x1] }
  0x66   : > { %v516_v30 = vshrl.u32 %v496_v26, 16  ;;  %v519_v31 = vshll.u32 %v496_v26, 16  ;;  %v530_v33 = vshrl.u32 %v498_v28, 16  ;;  %v533_v34 = vshll.u32 %v498_v28, 16  ;;  %v3581_v36 = vld [vmem:[%s4607_s13 + $0x8] sm:$0xf] }
  0x67   : > { %v3583_v40 = vld [vmem:[%s4607_s13 + $0x10] sm:$0xf]  ;;  %v527_v42 = vrot.slane %v525_v32, 5  ;;  %v541_v45 = vrot.slane %v539_v35, 5  ;;  %v3584_v46 = vld [vmem:[%s4607_s13 + $0x14] sm:$0x1] }
  0x68   : > { %3804 = vmatmul.mubr.msk.bf16.gmra.mrb[4].mxu1 %vm314_vm1, %v4191_v14  ;;  %3884 = vmatmul.mubr.msk.bf16.gmra.mrb[4].mxu0 %vm314_vm1, %v4192_v15  ;;  %v518_v37 = vrot.slane %v516_v30, 4  ;;  %v521_v38 = vrot.slane %v519_v31, 5  ;;  %v4199_v41 = vld [vmem:[%s4607_s13 + $0x30] ss:$8 sps:$4 sm:$0xff]   ;;  %v532_v43 = vrot.slane %v530_v33, 4  ;;  %v535_v44 = vrot.slane %v533_v34, 5 }
  0x69   : > { %3809 = vmatprep.mubr.msk.bf16.mxu1 %vm314_vm1, %v4193_v16  ;;  %3889 = vmatprep.mubr.msk.bf16.mxu0 %vm314_vm1, %v4194_v17  ;;  %v1924_v48 = vshrl.u32 %v3581_v36, 16  ;;  %v1927_v49 = vshll.u32 %v3581_v36, 16  ;;  %v1933_v50 = vshll.u32 %v3582_v39, 16  ;;  %v500_v51 = vld [vmem:[%s4607_s13 + $0x10] sm:$0xf]  ;;  %v1938_v54 = vshrl.u32 %v3583_v40, 16 }
  0x6a   : > { %v522_v47 = vor.u32 %v521_v38, %v518_v37  ;;  %v536_v53 = vor.u32 %v535_v44, %v532_v43  ;;  %v1941_v55 = vshll.u32 %v3583_v40, 16  ;;  %v1947_v56 = vshll.u32 %v3584_v46, 16  ;;  %v501_v57 = vld [vmem:[%s4607_s13 + $0x14] sm:$0x1]  ;;  %v502_v62 = vld [vmem:[%s4607_s13 + $0x18] sm:$0xf] }
  0x6b   : > { %v1926_v59 = vrot.slane %v1924_v48, 4  ;;  %v1929_v60 = vrot.slane %v1927_v49, 5  ;;  %v1935_v61 = vrot.slane %v1933_v50, 5  ;;  %v4200_v63 = vld [vmem:[%s4607_s13 + $0x80] ss:$8 sps:$4 sm:$0xff]   ;;  %v1940_v1 = vrot.slane %v1938_v54, 4 }
  0x6c   : > { %v523_v58 = vrot.slane %v522_v47, 4  ;;  %v537_v0 = vrot.slane %v536_v53, 4  ;;  %v1943_v2 = vrot.slane %v1941_v55, 5  ;;  %v1949_v3 = vrot.slane %v1947_v56, 5  ;;  %v858_v8 = vld [vmem:[#allocation5 + $0x6] sm:$0x3] }
  0x6d   : > { %v1930_v5 = vor.u32 %v1929_v60, %v1926_v59  ;;  %v544_v6 = vshrl.u32 %v500_v51, 16  ;;  %v547_v7 = vshll.u32 %v500_v51, 16  ;;  %v503_v11 = vld [vmem:[%s4607_s13 + $0x1c] sm:$0x1]  ;;  %v553_v12 = vshll.u32 %v501_v57, 16  ;;  %s3412_s23 = sshll.u32 %s4603_s9, 6 }
  0x6e   : > { %v528_v4 = vsel %vm4669_vm4, %v523_v58, %v527_v42  ;;  %v542_v9 = vsel %vm4669_vm4, %v537_v0, %v541_v45  ;;  %v1944_v10 = vor.u32 %v1943_v2, %v1940_v1  ;;  %v558_v13 = vshrl.u32 %v502_v62, 16  ;;  %v3585_v14 = vld [vmem:[%s4607_s13 + $0x18] sm:$0xf]  ;;  %v3586_v19 = vld [vmem:[%s4607_s13 + $0x1c] sm:$0x1]  ;;  %s5056_s25 = scalar_lea.vmem [#allocation7], %s3412_s23 }
  0x6f   : > { %v3437_v15 = vcombine.low %v528_v4, %v542_v9  ;;  %v1931_v16 = vrot.slane %v1930_v5, 4  ;;  %v546_v17 = vrot.slane %v544_v6, 4  ;;  %v549_v18 = vrot.slane %v547_v7, 5  ;;  %v3587_v28 = vld [vmem:[%s4607_s13 + $0x20] sm:$0xf]  ;;  %s3716_s10 = sshll.u32 %s4413_s18, 10 }
  0x70   : > { %3810 = vmatmul.mubr.msk.bf16.vlgmr.msra.gmra.mrb[0].mxu1 %vm314_vm1, %v4195_v20  ;;  %3890 = vmatmul.mubr.msk.bf16.vlgmr.msra.gmra.mrb[0].mxu0 %vm314_vm1, %v4196_v21  ;;  %v1945_v20 = vrot.slane %v1944_v10, 4  ;;  %v555_v21 = vrot.slane %v553_v12, 5  ;;  %v567_v27 = vshll.u32 %v503_v11, 16  ;;  %v1952_v29 = vshrl.u32 %v3585_v14, 16  ;;  %v3588_v32 = vld [vmem:[%s4607_s13 + $0x24] sm:$0x1]  ;;  %s5081_s6 = scalar_lea.hbm %s5220_s2, %s3716_s10 }
  0x71   : > { %3818 = vmatpush3.bf16.msra.mxu1 %v654_v22  ;;  %3813 = vmatprep.mubr.msk.bf16.mxu1 %vm314_vm1, %v4197_v24  ;;  %v560_v22 = vrot.slane %v558_v13, 4  ;;  %v2266_v24 = vld [vmem:[#allocation5 + $0x16] sm:$0x3]  ;;  %v550_v26 = vor.u32 %v549_v18, %v546_v17  ;;  %v1955_v33 = vshll.u32 %v3585_v14, 16  ;;  %v1961_v34 = vshll.u32 %v3586_v19, 16  ;;  %s3197_s11 = sshll.u32 %s5056_s25, 4  ;;  %s5083_s11 = int_to_ptr.vmem [resolvable:$true] %s3197_s11 }
  0x72   : > { %3898 = vmatpush3.bf16.msra.mxu0 %v2062_v23  ;;  %3893 = vmatprep.mubr.msk.bf16.mxu0 %vm314_vm1, %v4198_v25  ;;  %v561_v23 = vshll.u32 %v502_v62, 16  ;;  %v1936_v25 = vsel %vm4669_vm4, %v1931_v16, %v1935_v61  ;;  %v1950_v30 = vsel %vm4669_vm4, %v1945_v20, %v1949_v3  ;;  %v569_v37 = vrot.slane %v567_v27, 5  ;;  %v504_v39 = vld [vmem:[%s4607_s13 + $0x20] sm:$0xf]  ;;  %v505_v44 = vld [vmem:[%s4607_s13 + $0x24] sm:$0x1] }
  0x73   : > { %4080 = vmatprep.subr.msk.bf16.mxu1 %vm327_vm0, %v858_v8  ;;  %4088 = vmatprep.subr.msk.bf16.mxu0 %vm327_vm0, %v2266_v24  ;;  %v3597_v35 = vcombine.low %v1936_v25, %v1950_v30  ;;  %v551_v36 = vrot.slane %v550_v26, 4  ;;  %v1954_v38 = vrot.slane %v1952_v29, 4  ;;  %v1963_v42 = vrot.slane %v1961_v34, 5  ;;  %v506_v49 = vld [vmem:[%s4607_s13 + $0x28] sm:$0xf]  ;;  %s3174_s7 = scalar_lea.sflag [#allocation4], %s4603_s9 }
  0x74   : > { %v563_v31 = vrot.slane %v561_v23, 5  ;;  %v1966_v43 = vshrl.u32 %v3587_v28, 16  ;;  %v1969_v46 = vshll.u32 %v3587_v28, 16  ;;  %v1975_v47 = vshll.u32 %v3588_v32, 16  ;;  %v507_v57 = vld [vmem:[%s4607_s13 + $0x2c] sm:$0x1] }
  0x75   : > { %v556_v45 = vsel %vm4669_vm4, %v551_v36, %v555_v21  ;;  %v884_v48 = vsel %vm327_vm0, %v858_v8, 0  ;;  %v2292_v54 = vsel %vm327_vm0, %v2266_v24, 0  ;;  %v572_v58 = vshrl.u32 %v504_v39, 16  ;;  %v3589_v0 = vld [vmem:[%s4607_s13 + $0x28] sm:$0xf]  ;;  %s4275_s30 = scalar_lea.vmem %s5083_s11, 1024 }
  0x76   : > { %v564_v40 = vor.u32 %v563_v31, %v560_v22  ;;  %v1968_v53 = vrot.slane %v1966_v43, 4  ;;  %v1971_v55 = vrot.slane %v1969_v46, 5  ;;  %v1977_v56 = vrot.slane %v1975_v47, 5  ;;  %v3590_v5 = vld [vmem:[%s4607_s13 + $0x2c] sm:$0x1]  ;;  %p4276_p6 = scmp.ne.s32.totalorder %s5083_s11, %s4275_s30  ;;  %s4429_s27 = smov [#allocation7]  }
  0x77   : > { %v575_v59 = vshll.u32 %v504_v39, 16  ;;  %v581_v62 = vshll.u32 %v505_v44, 16  ;;  %v574_v3 = vrot.slane %v572_v58, 4  ;;  %v3591_v6 = vld [vmem:[%s4607_s13 + $0x30] sm:$0xf]  ;;  %v589_v10 = vshll.u32 %v506_v49, 16 }
  0x78   : > { %3814 = vmatmul.mubr.msk.bf16.gmra.mrb[4].mxu1 %vm314_vm1, %v4199_v41  ;;  %3894 = vmatmul.mubr.msk.bf16.gmra.mrb[4].mxu0 %vm314_vm1, %v4200_v63  ;;  %v1957_v41 = vrot.slane %v1955_v33, 5  ;;  %v565_v50 = vrot.slane %v564_v40, 4  ;;  %v586_v63 = vshrl.u32 %v506_v49, 16  ;;  %v1972_v2 = vor.u32 %v1971_v55, %v1968_v53  ;;  %v3592_v16 = vld [vmem:[%s4607_s13 + $0x34] sm:$0x1]  ;;  %p4277_p8 = pnand %p4276_p6, %p4549_p10  ;;  %s4279_s12 = sshll.u32 %s4429_s27, 4  ;;  %s4280_s12 = int_to_ptr.vmem [resolvable:$false] %s4279_s12 }
  0x79   : > { %3819 = vmatprep.mubr.msk.bf16.mxu1 %vm314_vm1, %v3437_v15  ;;  %3899 = vmatprep.mubr.msk.bf16.mxu0 %vm314_vm1, %v3597_v35  ;;  %v577_v4 = vrot.slane %v575_v59, 5  ;;  %v583_v8 = vrot.slane %v581_v62, 5  ;;  %v595_v13 = vshll.u32 %v507_v57, 16  ;;  %v1980_v14 = vshrl.u32 %v3589_v0, 16  ;;  %v508_v24 = vld [vmem:[%s4607_s13 + $0x30] sm:$0xf]  ;;  %p4282_p13 = scmp.lt.s32.totalorder %s5083_s11, %s4280_s12 }
  0x7a   : > { %v1958_v51 = vor.u32 %v1957_v41, %v1954_v38  ;;  %v570_v60 = vsel %vm4669_vm4, %v565_v50, %v569_v37  ;;  %v588_v9 = vrot.slane %v586_v63, 4  ;;  %v1973_v11 = vrot.slane %v1972_v2, 4  ;;  %v509_v29 = vld [vmem:[%s4607_s13 + $0x34] sm:$0x1]  ;;  %v510_v30 = vld [vmem:[%s4607_s13 + $0x38] sm:$0xf]  ;;  %p4278_p12 = pneg %p4277_p8 }
  0x7b   : > { %v3438_v1 = vcombine.low %v556_v45, %v570_v60  ;;  %v578_v12 = vor.u32 %v577_v4, %v574_v3  ;;  %v591_v15 = vrot.slane %v589_v10, 5  ;;  %v1983_v17 = vshll.u32 %v3589_v0, 16  ;;  %v511_v37 = vld [vmem:[%s4607_s13 + $0x3c] sm:$0x1]  ;;  %v3593_v44 = vld [vmem:[%s4607_s13 + $0x38] sm:$0xf] }
  0x7c   : > { %v1959_v61 = vrot.slane %v1958_v51, 4  ;;  %v1989_v18 = vshll.u32 %v3590_v5, 16  ;;  %v1994_v19 = vshrl.u32 %v3591_v6, 16  ;;  %v1978_v20 = vsel %vm4669_vm4, %v1973_v11, %v1977_v56  ;;  %v3594_v49 = vld [vmem:[%s4607_s13 + $0x3c] sm:$0x1]  ;;  %s4281_s28 = scalar_lea.vmem %s4280_s12, 2048 }
  0x7d   : > { %v579_v21 = vrot.slane %v578_v12, 4  ;;  %v597_v22 = vrot.slane %v595_v13, 5  ;;  %v1982_v23 = vrot.slane %v1980_v14, 4  ;;  %v592_v26 = vor.u32 %v591_v15, %v588_v9  ;;  %v3595_v56 = vld [vmem:[%s4607_s13 + $0x40] sm:$0xf]  ;;  %p4283_p0 = scmp.lt.s32.totalorder %s4281_s28, %s4275_s30 }
  0x7e   : > { %v1964_v7 = vsel %vm4669_vm4, %v1959_v61, %v1963_v42  ;;  %v1985_v27 = vrot.slane %v1983_v17, 5  ;;  %v1991_v28 = vrot.slane %v1989_v18, 5  ;;  %v1996_v32 = vrot.slane %v1994_v19, 4  ;;  %v3596_v60 = vld [vmem:[%s4607_s13 + $0x44] sm:$0x1] }
  0x7f   : > { %v3598_v25 = vcombine.low %v1964_v7, %v1978_v20  ;;  %v584_v31 = vsel %vm4669_vm4, %v579_v21, %v583_v8  ;;  %v1997_v33 = vshll.u32 %v3591_v6, 16  ;;  %v2003_v34 = vshll.u32 %v3592_v16, 16  ;;  %v3446_v6 = vld [vmem:[%s4607_s13 + $0x4c] sm:$0x1]  ;;  %v3447_v11 = vld [vmem:[%s4607_s13 + $0x50] sm:$0xf]  ;;  %p4284_p5 = por %p4283_p0, %p4282_p13 }
  0x80   : > { %3820 = vmatmul.mubr.msk.bf16.vlgmr.msra.gmra.mrb[0].mxu1 %vm314_vm1, %v3438_v1  ;;  %v593_v35 = vrot.slane %v592_v26, 4  ;;  %v1986_v36 = vor.u32 %v1985_v27, %v1982_v23  ;;  %v600_v38 = vshrl.u32 %v508_v24, 16  ;;  %v603_v39 = vshll.u32 %v508_v24, 16  ;;  %v3445_v1 = vld [vmem:[%s4607_s13 + $0x48] sm:$0xf] }
  0x81   : > { %3828 = vmatpush3.bf16.msra.mxu1 %v884_v48  ;;  %3900 = vmatmul.mubr.msk.bf16.vlgmr.msra.gmra.mrb[0].mxu0 %vm314_vm1, %v3598_v25  ;;  %v1999_v40 = vrot.slane %v1997_v33, 5  ;;  %v2005_v41 = vrot.slane %v2003_v34, 5  ;;  %v609_v42 = vshll.u32 %v509_v29, 16  ;;  %v614_v43 = vshrl.u32 %v510_v30, 16  ;;  %v4737_v16 = vld [vmem:[#allocation5 + $0x8] sm:$0x3]  ;;  %p4285_p9 = pnand %p4284_p5, %p4278_p12 }
  0x82   : > { %3908 = vmatpush3.bf16.msra.mxu0 %v2292_v54  ;;  %v598_v45 = vsel %vm4669_vm4, %v593_v35, %v597_v22  ;;  %v1987_v46 = vrot.slane %v1986_v36, 4  ;;  %v602_v47 = vrot.slane %v600_v38, 4  ;;  %v605_v48 = vrot.slane %v603_v39, 5  ;;  %v3448_v20 = vld [vmem:[%s4607_s13 + $0x54] sm:$0x1]  ;;  %4081 = vmatprep.subr.msk.bf16.mxu1 %vm327_vm0, %v4737_v16 }
  0x83   : > { %v3439_v50 = vcombine.low %v584_v31, %v598_v45  ;;  %v2000_v51 = vor.u32 %v1999_v40, %v1996_v32  ;;  %v611_v53 = vrot.slane %v609_v42, 5  ;;  %v616_v55 = vrot.slane %v614_v43, 4  ;;  %v3605_v22 = vld [vmem:[%s4607_s13 + $0x50] sm:$0xf]  ;;  %v3606_v27 = vld [vmem:[%s4607_s13 + $0x54] sm:$0x1] }
  0x84   : > { %v1992_v54 = vsel %vm4669_vm4, %v1987_v46, %v1991_v28  ;;  %v606_v57 = vor.u32 %v605_v48, %v602_v47  ;;  %v617_v58 = vshll.u32 %v510_v30, 16  ;;  %v623_v59 = vshll.u32 %v511_v37, 16  ;;  %v3607_v32 = vld [vmem:[%s4607_s13 + $0x58] sm:$0xf]  ;;  %v3608_v48 = vld [vmem:[%s4607_s13 + $0x5c] sm:$0x1] }
  0x85   : > { %3823 = vmatprep.mubr.msk.bf16.mxu1 %vm314_vm1, %v3439_v50  ;;  %v2001_v61 = vrot.slane %v2000_v51, 4  ;;  %v2008_v62 = vshrl.u32 %v3593_v44, 16  ;;  %v2011_v63 = vshll.u32 %v3593_v44, 16  ;;  %v2017_v0 = vshll.u32 %v3594_v49, 16  ;;  %v4748_v37 = vld [vmem:[#allocation5 + $0x18] sm:$0x3] }
  0x86   : > { %v607_v2 = vrot.slane %v606_v57, 4  ;;  %v619_v3 = vrot.slane %v617_v58, 5  ;;  %v625_v4 = vrot.slane %v623_v59, 5  ;;  %v2022_v5 = vshrl.u32 %v3595_v56, 16  ;;  %4089 = vmatprep.subr.msk.bf16.mxu0 %vm327_vm0, %v4748_v37 }
  0x87   : > { %v2006_v7 = vsel %vm4669_vm4, %v2001_v61, %v2005_v41  ;;  %v2010_v8 = vrot.slane %v2008_v62, 4  ;;  %v2013_v9 = vrot.slane %v2011_v63, 5  ;;  %v2019_v10 = vrot.slane %v2017_v0, 5  ;;  %v3450_v61 = vld [vmem:[%s4607_s13 + $0x5c] sm:$0x1] }
  0x88   : > { %v3599_v12 = vcombine.low %v1992_v54, %v2006_v7  ;;  %v612_v13 = vsel %vm4669_vm4, %v607_v2, %v611_v53  ;;  %v620_v14 = vor.u32 %v619_v3, %v616_v55  ;;  %v2024_v15 = vrot.slane %v2022_v5, 4  ;;  %v3449_v54 = vld [vmem:[%s4607_s13 + $0x58] sm:$0xf]  ;;  %v3451_v62 = vld [vmem:[%s4607_s13 + $0x60] sm:$0xf] }
  0x89   : > { %v2014_v17 = vor.u32 %v2013_v9, %v2010_v8  ;;  %v2025_v18 = vshll.u32 %v3595_v56, 16  ;;  %v2031_v19 = vshll.u32 %v3596_v60, 16  ;;  %v746_v21 = vshrl.u32 %v3445_v1, 16  ;;  %v3452_v5 = vld [vmem:[%s4607_s13 + $0x64] sm:$0x1] }
  0x8a   : > { %3903 = vmatprep.mubr.msk.bf16.mxu0 %vm314_vm1, %v3599_v12  ;;  %v621_v23 = vrot.slane %v620_v14, 4  ;;  %v749_v24 = vshll.u32 %v3445_v1, 16  ;;  %v755_v25 = vshll.u32 %v3446_v6, 16  ;;  %v760_v26 = vshrl.u32 %v3447_v11, 16  ;;  %v3609_v12 = vld [vmem:[%s4607_s13 + $0x60] sm:$0xf] }
  0x8b   : > { %v2015_v28 = vrot.slane %v2014_v17, 4  ;;  %v2027_v29 = vrot.slane %v2025_v18, 5  ;;  %v2033_v30 = vrot.slane %v2031_v19, 5  ;;  %v748_v31 = vrot.slane %v746_v21, 4  ;;  %v3610_v18 = vld [vmem:[%s4607_s13 + $0x64] sm:$0x1] }
  0x8c   : > { %v626_v33 = vsel %vm4669_vm4, %v621_v23, %v625_v4  ;;  %v751_v34 = vrot.slane %v749_v24, 5  ;;  %v757_v35 = vrot.slane %v755_v25, 5  ;;  %v762_v36 = vrot.slane %v760_v26, 4  ;;  %v3611_v23 = vld [vmem:[%s4607_s13 + $0x68] sm:$0xf] }
  0x8d   : > { %v3440_v38 = vcombine.low %v612_v13, %v626_v33  ;;  %v2020_v39 = vsel %vm4669_vm4, %v2015_v28, %v2019_v10  ;;  %v2028_v40 = vor.u32 %v2027_v29, %v2024_v15  ;;  %v763_v41 = vshll.u32 %v3447_v11, 16  ;;  %v3612_v28 = vld [vmem:[%s4607_s13 + $0x6c] sm:$0x1]  ;;  %v3453_v33 = vld [vmem:[%s4607_s13 + $0x68] sm:$0xf] }
  0x8e   : > { %v752_v42 = vor.u32 %v751_v34, %v748_v31  ;;  %v769_v43 = vshll.u32 %v3448_v20, 16  ;;  %v2154_v44 = vshrl.u32 %v3605_v22, 16  ;;  %v2157_v45 = vshll.u32 %v3605_v22, 16 }
  0x8f   : > { %3824 = vmatmul.mubr.msk.bf16.gmra.mrb[4].mxu1 %vm314_vm1, %v3440_v38  ;;  %v2029_v46 = vrot.slane %v2028_v40, 4  ;;  %v765_v47 = vrot.slane %v763_v41, 5  ;;  %v2163_v49 = vshll.u32 %v3606_v27, 16  ;;  %v2168_v50 = vshrl.u32 %v3607_v32, 16  ;;  %v3454_v38 = vld [vmem:[%s4607_s13 + $0x6c] sm:$0x1] }
  0x90   : > { %v753_v51 = vrot.slane %v752_v42, 4  ;;  %v771_v53 = vrot.slane %v769_v43, 5  ;;  %v2156_v55 = vrot.slane %v2154_v44, 4  ;;  %v2159_v56 = vrot.slane %v2157_v45, 5 }
  0x91   : > { %v2034_v57 = vsel %vm4669_vm4, %v2029_v46, %v2033_v30  ;;  %v766_v58 = vor.u32 %v765_v47, %v762_v36  ;;  %v2165_v59 = vrot.slane %v2163_v49, 5  ;;  %v2170_v60 = vrot.slane %v2168_v50, 4  ;;  %v3455_v47 = vld [vmem:[%s4607_s13 + $0x70] sm:$0xf] }
  0x92   : > { %v3600_v63 = vcombine.low %v2020_v39, %v2034_v57  ;;  %v758_v0 = vsel %vm4669_vm4, %v753_v51, %v757_v35  ;;  %v2160_v1 = vor.u32 %v2159_v56, %v2156_v55  ;;  %v2171_v2 = vshll.u32 %v3607_v32, 16 }
  0x93   : > { %v767_v3 = vrot.slane %v766_v58, 4  ;;  %v2177_v4 = vshll.u32 %v3608_v48, 16  ;;  %v774_v6 = vshrl.u32 %v3449_v54, 16  ;;  %v777_v7 = vshll.u32 %v3449_v54, 16  ;;  %v3613_v58 = vld [vmem:[%s4607_s13 + $0x70] sm:$0xf] }
  0x94   : > { %3904 = vmatmul.mubr.msk.bf16.gmra.mrb[4].mxu0 %vm314_vm1, %v3600_v63  ;;  %v2161_v8 = vrot.slane %v2160_v1, 4  ;;  %v2173_v9 = vrot.slane %v2171_v2, 5  ;;  %v783_v10 = vshll.u32 %v3450_v61, 16  ;;  %v788_v11 = vshrl.u32 %v3451_v62, 16  ;;  %v3614_v63 = vld [vmem:[%s4607_s13 + $0x74] sm:$0x1] }
  0x95   : > { %v772_v13 = vsel %vm4669_vm4, %v767_v3, %v771_v53  ;;  %v2179_v14 = vrot.slane %v2177_v4, 5  ;;  %v776_v15 = vrot.slane %v774_v6, 4  ;;  %v779_v17 = vrot.slane %v777_v7, 5  ;;  %v3456_v53 = vld [vmem:[%s4607_s13 + $0x74] sm:$0x1] }
  0x96   : > { %v3461_v19 = vcombine.low %v758_v0, %v772_v13  ;;  %v2166_v20 = vsel %vm4669_vm4, %v2161_v8, %v2165_v59  ;;  %v2174_v21 = vor.u32 %v2173_v9, %v2170_v60  ;;  %v785_v22 = vrot.slane %v783_v10, 5  ;;  %v3615_v7 = vld [vmem:[%s4607_s13 + $0x78] sm:$0xf]  ;;  %v4792_v8 = vld [vmem:[#allocation5 + $0xa] sm:$0x3] }
  0x97   : > { %v780_v24 = vor.u32 %v779_v17, %v776_v15  ;;  %v790_v25 = vrot.slane %v788_v11, 4  ;;  %v791_v26 = vshll.u32 %v3451_v62, 16  ;;  %v797_v27 = vshll.u32 %v3452_v5, 16  ;;  %v3457_v13 = vld [vmem:[%s4607_s13 + $0x78] sm:$0xf] }
  0x98   : > { %3829 = vmatprep.mubr.msk.bf16.mxu1 %vm314_vm1, %v3461_v19  ;;  %v2175_v29 = vrot.slane %v2174_v21, 4  ;;  %v2182_v30 = vshrl.u32 %v3609_v12, 16  ;;  %v2185_v31 = vshll.u32 %v3609_v12, 16  ;;  %v2191_v32 = vshll.u32 %v3610_v18, 16  ;;  %v3616_v12 = vld [vmem:[%s4607_s13 + $0x7c] sm:$0x1] }
  0x99   : > { %v781_v34 = vrot.slane %v780_v24, 4  ;;  %v793_v35 = vrot.slane %v791_v26, 5  ;;  %v2196_v36 = vshrl.u32 %v3611_v23, 16  ;;  %v799_v40 = vrot.slane %v797_v27, 5 }
  0x9a   : > { %v2180_v39 = vsel %vm4669_vm4, %v2175_v29, %v2179_v14  ;;  %v2184_v41 = vrot.slane %v2182_v30, 4  ;;  %v2187_v42 = vrot.slane %v2185_v31, 5  ;;  %v2193_v46 = vrot.slane %v2191_v32, 5 }
  0x9b   : > { %v3621_v43 = vcombine.low %v2166_v20, %v2180_v39  ;;  %v786_v44 = vsel %vm4669_vm4, %v781_v34, %v785_v22  ;;  %v794_v45 = vor.u32 %v793_v35, %v790_v25  ;;  %v2198_v49 = vrot.slane %v2196_v36, 4  ;;  %v3460_v36 = vld [vmem:[%s4607_s13 + $0x84] sm:$0x1]  ;;  %v3617_v39 = vld [vmem:[%s4607_s13 + $0x80] sm:$0xf] }
  0x9c   : > { %v2188_v48 = vor.u32 %v2187_v42, %v2184_v41  ;;  %v2199_v50 = vshll.u32 %v3611_v23, 16  ;;  %v2205_v51 = vshll.u32 %v3612_v28, 16  ;;  %v1006_v56 = vsel %vm327_vm0, %v4737_v16, 0  ;;  %v3458_v23 = vld [vmem:[%s4607_s13 + $0x7c] sm:$0x1] }
  0x9d   : > { %3909 = vmatprep.mubr.msk.bf16.mxu0 %vm314_vm1, %v3621_v43  ;;  %v795_v55 = vrot.slane %v794_v45, 4  ;;  %v802_v54 = vshrl.u32 %v3453_v33, 16  ;;  %v805_v57 = vshll.u32 %v3453_v33, 16  ;;  %v2414_v61 = vsel %vm327_vm0, %v4748_v37, 0  ;;  %v3459_v28 = vld [vmem:[%s4607_s13 + $0x80] sm:$0xf] }
  0x9e   : > { %v2189_v59 = vrot.slane %v2188_v48, 4  ;;  %v2201_v60 = vrot.slane %v2199_v50, 5  ;;  %v811_v62 = vshll.u32 %v3454_v38, 16  ;;  %v816_v3 = vshrl.u32 %v3455_v47, 16 }
  0x9f   : > { %v800_v0 = vsel %vm4669_vm4, %v795_v55, %v799_v40  ;;  %v804_v1 = vrot.slane %v802_v54, 4  ;;  %v807_v2 = vrot.slane %v805_v57, 5  ;;  %v2207_v5 = vrot.slane %v2205_v51, 5  ;;  %v4809_v40 = vld [vmem:[#allocation5 + $0x1a] sm:$0x3] }
  0xa0   : > { %v3462_v16 = vcombine.low %v786_v44, %v800_v0  ;;  %v2202_v4 = vor.u32 %v2201_v60, %v2198_v49  ;;  %v813_v6 = vrot.slane %v811_v62, 5  ;;  %v818_v37 = vrot.slane %v816_v3, 4  ;;  %v3618_v49 = vld [vmem:[%s4607_s13 + $0x84] sm:$0x1]  ;;  %v3620_v62 = vld [vmem:[%s4607_s13 + $0x8c] sm:$0x1] }
  0xa1   : > { %v808_v9 = vor.u32 %v807_v2, %v804_v1  ;;  %v819_v10 = vshll.u32 %v3455_v47, 16  ;;  %v825_v11 = vshll.u32 %v3456_v53, 16  ;;  %v2194_v14 = vsel %vm4669_vm4, %v2189_v59, %v2193_v46 }
  0xa2   : > { %3830 = vmatmul.mubr.msk.bf16.vlgmr.msra.gmra.mrb[0].mxu1 %vm314_vm1, %v3462_v16  ;;  %v2203_v15 = vrot.slane %v2202_v4, 4  ;;  %v2210_v17 = vshrl.u32 %v3613_v58, 16  ;;  %v2213_v18 = vshll.u32 %v3613_v58, 16  ;;  %v2219_v21 = vshll.u32 %v3614_v63, 16 }
  0xa3   : > { %3838 = vmatpush3.bf16.msra.mxu1 %v1006_v56  ;;  %v809_v19 = vrot.slane %v808_v9, 4  ;;  %v821_v20 = vrot.slane %v819_v10, 5  ;;  %v2224_v22 = vshrl.u32 %v3615_v7, 16  ;;  %v827_v25 = vrot.slane %v825_v11, 5  ;;  %v3619_v56 = vld [vmem:[%s4607_s13 + $0x88] sm:$0xf] }
  0xa4   : > { %v2208_v24 = vsel %vm4669_vm4, %v2203_v15, %v2207_v5  ;;  %v2212_v26 = vrot.slane %v2210_v17, 4  ;;  %v2215_v27 = vrot.slane %v2213_v18, 5  ;;  %4082 = vmatprep.subr.msk.bf16.mxu1 %vm327_vm0, %v4792_v8  ;;  %v2227_v34 = vshll.u32 %v3615_v7, 16 }
  0xa5   : > { %v3622_v29 = vcombine.low %v2194_v14, %v2208_v24  ;;  %v814_v30 = vsel %vm4669_vm4, %v809_v19, %v813_v6  ;;  %v822_v31 = vor.u32 %v821_v20, %v818_v37  ;;  %v2226_v32 = vrot.slane %v2224_v22, 4 }
  0xa6   : > { %v2216_v33 = vor.u32 %v2215_v27, %v2212_v26  ;;  %v2233_v35 = vshll.u32 %v3616_v12, 16  ;;  %v830_v38 = vshrl.u32 %v3457_v13, 16  ;;  %v833_v42 = vshll.u32 %v3457_v13, 16 }
  0xa7   : > { %3910 = vmatmul.mubr.msk.bf16.vlgmr.msra.gmra.mrb[0].mxu0 %vm314_vm1, %v3622_v29  ;;  %v823_v41 = vrot.slane %v822_v31, 4  ;;  %v839_v43 = vshll.u32 %v3458_v23, 16  ;;  %v844_v44 = vshrl.u32 %v3459_v28, 16  ;;  %v2221_v46 = vrot.slane %v2219_v21, 5  ;;  %v4201_v23 = vld [vmem:[%s4607_s13 + $0x90] ss:$8 sps:$4 sm:$0xff]  }
  0xa8   : > { %3918 = vmatpush3.bf16.msra.mxu0 %v2414_v61  ;;  %v2217_v45 = vrot.slane %v2216_v33, 4  ;;  %v2229_v47 = vrot.slane %v2227_v34, 5  ;;  %v832_v48 = vrot.slane %v830_v38, 4  ;;  %v2235_v51 = vrot.slane %v2233_v35, 5  ;;  %v4202_v29 = vld [vmem:[%s4607_s13 + $0x98] ss:$8 sps:$4 sm:$0xff]  }
  0xa9   : > { %v828_v50 = vsel %vm4669_vm4, %v823_v41, %v827_v25  ;;  %v835_v53 = vrot.slane %v833_v42, 5  ;;  %v841_v55 = vrot.slane %v839_v43, 5  ;;  %4090 = vmatprep.subr.msk.bf16.mxu0 %vm327_vm0, %v4809_v40  ;;  %v846_v58 = vrot.slane %v844_v44, 4  ;;  %v4835_v31 = vld [vmem:[#allocation5 + $0x1c] sm:$0x3] }
  0xaa   : > { %v3463_v54 = vcombine.low %v814_v30, %v828_v50  ;;  %v2230_v57 = vor.u32 %v2229_v47, %v2226_v32  ;;  %v847_v59 = vshll.u32 %v3459_v28, 16  ;;  %v853_v61 = vshll.u32 %v3460_v36, 16  ;;  %v1332_v30 = vld [vmem:[#allocation5 + $0xc] sm:$0x3]  ;;  %v4203_v33 = vld [vmem:[%s4607_s13 + $0xa0] ss:$8 sps:$4 sm:$0xff]  }
  0xab   : > { %v836_v60 = vor.u32 %v835_v53, %v832_v48  ;;  %v2238_v63 = vshrl.u32 %v3617_v39, 16  ;;  %v2241_v0 = vshll.u32 %v3617_v39, 16  ;;  %v2222_v1 = vsel %vm4669_vm4, %v2217_v45, %v2221_v46  ;;  %v4205_v38 = vld [vmem:[%s4607_s13 + $0xb0] ss:$8 sps:$4 sm:$0xff]   ;;  %v3502_v43 = vld [vmem:[%s4607_s13 + $0x94] sm:$0x1] }
  0xac   : > { %3833 = vmatprep.mubr.msk.bf16.mxu1 %vm314_vm1, %v3463_v54  ;;  %v2231_v2 = vrot.slane %v2230_v57, 4  ;;  %v849_v3 = vrot.slane %v847_v59, 5  ;;  %v2252_v16 = vshrl.u32 %v3619_v56, 16  ;;  %v2247_v7 = vshll.u32 %v3618_v49, 16  ;;  %v3501_v42 = vld [vmem:[%s4607_s13 + $0x90] sm:$0xf] }
  0xad   : > { %v837_v4 = vrot.slane %v836_v60, 4  ;;  %v2240_v5 = vrot.slane %v2238_v63, 4  ;;  %v2243_v6 = vrot.slane %v2241_v0, 5  ;;  %v855_v10 = vrot.slane %v853_v61, 5  ;;  %v3503_v44 = vld [vmem:[%s4607_s13 + $0x98] sm:$0xf] }
  0xae   : > { %v2236_v9 = vsel %vm4669_vm4, %v2231_v2, %v2235_v51  ;;  %v850_v37 = vor.u32 %v849_v3, %v846_v58  ;;  %v2254_v13 = vrot.slane %v2252_v16, 4  ;;  %v2255_v14 = vshll.u32 %v3619_v56, 16  ;;  %v3661_v48 = vld [vmem:[%s4607_s13 + $0x98] sm:$0xf]  ;;  %v4204_v49 = vld [vmem:[%s4607_s13 + $0xa8] ss:$8 sps:$4 sm:$0xff]  }
  0xaf   : > { %v3623_v11 = vcombine.low %v2222_v1, %v2236_v9  ;;  %v2244_v12 = vor.u32 %v2243_v6, %v2240_v5  ;;  %v842_v15 = vsel %vm4669_vm4, %v837_v4, %v841_v55  ;;  %v2261_v18 = vshll.u32 %v3620_v62, 16  ;;  %v3662_v53 = vld [vmem:[%s4607_s13 + $0x9c] sm:$0x1]  ;;  %v3663_v55 = vld [vmem:[%s4607_s13 + $0xa0] sm:$0xf] }
  0xb0   : > { %v851_v17 = vrot.slane %v850_v37, 4  ;;  %v2249_v20 = vrot.slane %v2247_v7, 5  ;;  %v2257_v21 = vrot.slane %v2255_v14, 5  ;;  %v1128_v35 = vsel %vm327_vm0, %v4792_v8, 0  ;;  %v3504_v8 = vld [vmem:[%s4607_s13 + $0x9c] sm:$0x1] }
  0xb1   : > { %3913 = vmatprep.mubr.msk.bf16.mxu0 %vm314_vm1, %v3623_v11  ;;  %v2245_v19 = vrot.slane %v2244_v12, 4  ;;  %v2263_v26 = vrot.slane %v2261_v18, 5  ;;  %v2536_v36 = vsel %vm327_vm0, %v4809_v40, 0  ;;  %v4846_v39 = vsel %vm327_vm0, %v1332_v30, 0  ;;  %v3664_v59 = vld [vmem:[%s4607_s13 + $0xa4] sm:$0x1] }
  0xb2   : > { %v856_v22 = vsel %vm4669_vm4, %v851_v17, %v855_v10  ;;  %v2258_v25 = vor.u32 %v2257_v21, %v2254_v13  ;;  %v4850_v41 = vsel %vm327_vm0, %v4835_v31, 0  ;;  %v1220_v40 = vshrl.u32 %v3501_v42, 16  ;;  %v4206_v60 = vld [vmem:[%s4607_s13 + $0xb8] ss:$8 sps:$4 sm:$0xff]   ;;  %v3506_v10 = vld [vmem:[%s4607_s13 + $0xa4] sm:$0x1] }
  0xb3   : > { %v3464_v24 = vcombine.low %v842_v15, %v856_v22  ;;  %v2250_v27 = vsel %vm4669_vm4, %v2245_v19, %v2249_v20  ;;  %v1223_v45 = vshll.u32 %v3501_v42, 16  ;;  %v1229_v46 = vshll.u32 %v3502_v43, 16  ;;  %v4207_v1 = vld [vmem:[%s4607_s13 + $0xc0] ss:$8 sps:$4 sm:$0xff]  }
  0xb4   : > { %v2259_v28 = vrot.slane %v2258_v25, 4  ;;  %v1234_v47 = vshrl.u32 %v3503_v44, 16  ;;  %v1237_v50 = vshll.u32 %v3503_v44, 16  ;;  %v1243_v51 = vshll.u32 %v3504_v8, 16  ;;  %v3505_v5 = vld [vmem:[%s4607_s13 + $0xa0] sm:$0xf] }
  0xb5   : > { %3834 = vmatmul.mubr.msk.bf16.gmra.mrb[4].mxu1 %vm314_vm1, %v3464_v24  ;;  %v1222_v56 = vrot.slane %v1220_v40, 4  ;;  %v1225_v54 = vrot.slane %v1223_v45, 5  ;;  %v1231_v57 = vrot.slane %v1229_v46, 5  ;;  %v2628_v63 = vshrl.u32 %v3661_v48, 16  ;;  %v3507_v15 = vld [vmem:[%s4607_s13 + $0xa8] sm:$0xf] }
  0xb6   : > { %3839 = vmatprep.mubr.msk.bf16.mxu1 %vm314_vm1, %v4201_v23  ;;  %v2264_v32 = vsel %vm4669_vm4, %v2259_v28, %v2263_v26  ;;  %v1236_v58 = vrot.slane %v1234_v47, 4  ;;  %v1239_v61 = vrot.slane %v1237_v50, 5  ;;  %v1245_v62 = vrot.slane %v1243_v51, 5  ;;  %v4209_v17 = vld [vmem:[%s4607_s13 + $0xd8] ss:$8 sps:$4 sm:$0xff]  }
  0xb7   : > { %v3624_v34 = vcombine.low %v2250_v27, %v2264_v32  ;;  %v2631_v0 = vshll.u32 %v3661_v48, 16  ;;  %v1226_v2 = vor.u32 %v1225_v54, %v1222_v56  ;;  %v2637_v3 = vshll.u32 %v3662_v53, 16  ;;  %v3508_v24 = vld [vmem:[%s4607_s13 + $0xac] sm:$0x1]  ;;  %v4208_v27 = vld [vmem:[%s4607_s13 + $0xc8] ss:$8 sps:$4 sm:$0xff]  }
  0xb8   : > { %v2642_v16 = vshrl.u32 %v3663_v55, 16  ;;  %v2645_v4 = vshll.u32 %v3663_v55, 16  ;;  %v1240_v6 = vor.u32 %v1239_v61, %v1236_v58  ;;  %v2630_v7 = vrot.slane %v2628_v63, 4  ;;  %v3667_v45 = vld [vmem:[%s4607_s13 + $0xb0] sm:$0xf] }
  0xb9   : > { %3914 = vmatmul.mubr.msk.bf16.gmra.mrb[4].mxu0 %vm314_vm1, %v3624_v34  ;;  %v2633_v9 = vrot.slane %v2631_v0, 5  ;;  %v2651_v37 = vshll.u32 %v3664_v59, 16  ;;  %v1227_v11 = vrot.slane %v1226_v2, 4  ;;  %v2639_v12 = vrot.slane %v2637_v3, 5  ;;  %v4210_v34 = vld [vmem:[%s4607_s13 + $0xe0] ss:$8 sps:$4 sm:$0xff]  }
  0xba   : > { %3919 = vmatprep.mubr.msk.bf16.mxu0 %vm314_vm1, %v4202_v29  ;;  %v2644_v13 = vrot.slane %v2642_v16, 4  ;;  %v2647_v14 = vrot.slane %v2645_v4, 5  ;;  %v1241_v18 = vrot.slane %v1240_v6, 4  ;;  %v1248_v21 = vshrl.u32 %v3505_v5, 16  ;;  %v4211_v46 = vld [vmem:[%s4607_s13 + $0xe8] ss:$8 sps:$4 sm:$0xff]  }
  0xbb   : > { %v2634_v19 = vor.u32 %v2633_v9, %v2630_v7  ;;  %v2653_v20 = vrot.slane %v2651_v37, 5  ;;  %v1232_v22 = vsel %vm4669_vm4, %v1227_v11, %v1231_v57  ;;  %v1251_v25 = vshll.u32 %v3505_v5, 16  ;;  %v3668_v50 = vld [vmem:[%s4607_s13 + $0xb4] sm:$0x1]  ;;  %v4213_v55 = vld [vmem:[%s4607_s13 + $0xf8] ss:$8 sps:$4 sm:$0xff]  }
  0xbc   : > { %v2648_v23 = vor.u32 %v2647_v14, %v2644_v13  ;;  %v1257_v26 = vshll.u32 %v3506_v10, 16  ;;  %v1246_v28 = vsel %vm4669_vm4, %v1241_v18, %v1245_v62  ;;  %v1262_v32 = vshrl.u32 %v3507_v15, 16  ;;  %v4899_v59 = vld [vmem:[#allocation5 + $0x1e] sm:$0x3]  ;;  %v3509_v0 = vld [vmem:[%s4607_s13 + $0xb0] sm:$0xf] }
  0xbd   : > { %3840 = vmatmul.mubr.msk.bf16.vlgmr.msra.gmra.mrb[0].mxu1 %vm314_vm1, %v4203_v33  ;;  %v2635_v29 = vrot.slane %v2634_v19, 4  ;;  %v3665_v33 = vld [vmem:[%s4607_s13 + $0xa8] sm:$0xf]  ;;  %v1265_v8 = vshll.u32 %v3507_v15, 16  ;;  %v1271_v40 = vshll.u32 %v3508_v24, 16  ;;  %v2670_v63 = vshrl.u32 %v3667_v45, 16 }
  0xbe   : > { %3848 = vmatpush3.bf16.msra.mxu1 %v1128_v35  ;;  %3843 = vmatprep.mubr.msk.bf16.mxu1 %vm314_vm1, %v4205_v38  ;;  %v4885_v35 = vcombine.low %v1232_v22, %v1246_v28  ;;  %v1253_v38 = vrot.slane %v1251_v25, 5  ;;  %v1259_v42 = vrot.slane %v1257_v26, 5  ;;  %v1264_v44 = vrot.slane %v1262_v32, 4  ;;  %v3510_v4 = vld [vmem:[%s4607_s13 + $0xb4] sm:$0x1] }
  0xbf   : > { %4083 = vmatprep.subr.msk.bf16.mxu1 %vm327_vm0, %v1332_v30  ;;  %v1250_v30 = vrot.slane %v1248_v21, 4  ;;  %v2640_v43 = vsel %vm4669_vm4, %v2635_v29, %v2639_v12  ;;  %v2656_v51 = vshrl.u32 %v3665_v33, 16  ;;  %v2659_v53 = vshll.u32 %v3665_v33, 16  ;;  %v3511_v37 = vld [vmem:[%s4607_s13 + $0xb8] sm:$0xf] }
  0xc0   : > { %v1267_v54 = vrot.slane %v1265_v8, 5  ;;  %v1273_v57 = vrot.slane %v1271_v40, 5  ;;  %v2673_v3 = vshll.u32 %v3667_v45, 16  ;;  %v2679_v16 = vshll.u32 %v3668_v50, 16  ;;  %v4212_v10 = vld [vmem:[%s4607_s13 + $0xf0] ss:$8 sps:$4 sm:$0xff]  }
  0xc1   : > { %3920 = vmatmul.mubr.msk.bf16.vlgmr.msra.gmra.mrb[0].mxu0 %vm314_vm1, %v4204_v49  ;;  %v1254_v48 = vor.u32 %v1253_v38, %v1250_v30  ;;  %v1562_v49 = vld [vmem:[#allocation5 + $0xe] sm:$0x3]  ;;  %v2658_v61 = vrot.slane %v2656_v51, 4  ;;  %v2661_v62 = vrot.slane %v2659_v53, 5  ;;  %v2672_v7 = vrot.slane %v2670_v63, 4 }
  0xc2   : > { %3928 = vmatpush3.bf16.msra.mxu0 %v2536_v36  ;;  %3923 = vmatprep.mubr.msk.bf16.mxu0 %vm314_vm1, %v4206_v60  ;;  %v2649_v36 = vrot.slane %v2648_v23, 4  ;;  %v4908_v9 = vsel %vm327_vm0, %v1562_v49, 0  ;;  %v2675_v12 = vrot.slane %v2673_v3, 5  ;;  %v2681_v13 = vrot.slane %v2679_v16, 5  ;;  %v4214_v15 = vld [vmem:[%s4607_s13 + $0x100] ss:$8 sps:$4 sm:$0xff]  }
  0xc3   : > { %4091 = vmatprep.subr.msk.bf16.mxu0 %vm327_vm0, %v4835_v31  ;;  %v3666_v31 = vld [vmem:[%s4607_s13 + $0xac] sm:$0x1]  ;;  %v1255_v60 = vrot.slane %v1254_v48, 4  ;;  %v2662_v6 = vor.u32 %v2661_v62, %v2658_v61  ;;  %v4914_v14 = vsel %vm327_vm0, %v4899_v59, 0  ;;  %v1276_v18 = vshrl.u32 %v3509_v0, 16 }
  0xc4   : > { %v2654_v47 = vsel %vm4669_vm4, %v2649_v36, %v2653_v20  ;;  %v2665_v58 = vshll.u32 %v3666_v31, 16  ;;  %v1279_v19 = vshll.u32 %v3509_v0, 16  ;;  %v1285_v20 = vshll.u32 %v3510_v4, 16  ;;  %v3512_v23 = vld [vmem:[%s4607_s13 + $0xbc] sm:$0x1] }
  0xc5   : > { %3844 = vmatmul.mubr.msk.bf16.gmra.mrb[4].mxu1 %vm314_vm1, %v4207_v1  ;;  %v4897_v56 = vcombine.low %v2640_v43, %v2654_v47  ;;  %v1268_v1 = vor.u32 %v1267_v54, %v1264_v44  ;;  %v1260_v5 = vsel %vm4669_vm4, %v1255_v60, %v1259_v42  ;;  %v2676_v22 = vor.u32 %v2675_v12, %v2672_v7  ;;  %v3669_v26 = vld [vmem:[%s4607_s13 + $0xb8] sm:$0xf]  ;;  %v3670_v30 = vld [vmem:[%s4607_s13 + $0xbc] sm:$0x1]  ;;  %v3671_v32 = vld [vmem:[%s4607_s13 + $0xc0] sm:$0xf] }
  0xc6   : > { %3849 = vmatprep.mubr.msk.bf16.mxu1 %vm314_vm1, %v4209_v17  ;;  %v2667_v2 = vrot.slane %v2665_v58, 5  ;;  %v2663_v17 = vrot.slane %v2662_v6, 4  ;;  %v1290_v24 = vshrl.u32 %v3511_v37, 16  ;;  %v1293_v25 = vshll.u32 %v3511_v37, 16  ;;  %v4215_v42 = vld [vmem:[%s4607_s13 + $0x108] ss:$8 sps:$4 sm:$0xff]  }
  0xc7   : > { %v1269_v11 = vrot.slane %v1268_v1, 4  ;;  %v1278_v29 = vrot.slane %v1276_v18, 4  ;;  %v2677_v33 = vrot.slane %v2676_v22, 4  ;;  %v1299_v43 = vshll.u32 %v3512_v23, 16  ;;  %v3514_v54 = vld [vmem:[%s4607_s13 + $0xc4] sm:$0x1] }
  0xc8   : > { %v2668_v28 = vsel %vm4669_vm4, %v2663_v17, %v2667_v2  ;;  %v1292_v36 = vrot.slane %v1290_v24, 4  ;;  %v1295_v38 = vrot.slane %v1293_v25, 5  ;;  %v2684_v44 = vshrl.u32 %v3669_v26, 16  ;;  %v3515_v1 = vld [vmem:[%s4607_s13 + $0xc8] sm:$0xf] }
  0xc9   : > { %3924 = vmatmul.mubr.msk.bf16.gmra.mrb[4].mxu0 %vm314_vm1, %v4208_v27  ;;  %v1274_v21 = vsel %vm4669_vm4, %v1269_v11, %v1273_v57  ;;  %v2687_v8 = vshll.u32 %v3669_v26, 16  ;;  %v2682_v40 = vsel %vm4669_vm4, %v2677_v33, %v2681_v13  ;;  %v2693_v47 = vshll.u32 %v3670_v30, 16  ;;  %v4216_v57 = vld [vmem:[%s4607_s13 + $0x110] ss:$8 sps:$4 sm:$0xff]   ;;  %v3516_v16 = vld [vmem:[%s4607_s13 + $0xcc] sm:$0x1] }
  0xca   : > { %3929 = vmatprep.mubr.msk.bf16.mxu0 %vm314_vm1, %v4210_v34  ;;  %v4924_v27 = vcombine.low %v1260_v5, %v1274_v21  ;;  %v1287_v34 = vrot.slane %v1285_v20, 5  ;;  %v1296_v45 = vor.u32 %v1295_v38, %v1292_v36  ;;  %v2698_v48 = vshrl.u32 %v3671_v32, 16  ;;  %v3673_v6 = vld [vmem:[%s4607_s13 + $0xc8] sm:$0xf]  ;;  %v3674_v18 = vld [vmem:[%s4607_s13 + $0xcc] sm:$0x1] }
  0xcb   : > { %v4939_v50 = vcombine.low %v2668_v28, %v2682_v40  ;;  %v1301_v53 = vrot.slane %v1299_v43, 5  ;;  %v2689_v60 = vrot.slane %v2687_v8, 5  ;;  %v2695_v61 = vrot.slane %v2693_v47, 5  ;;  %v3675_v21 = vld [vmem:[%s4607_s13 + $0xd0] sm:$0xf] }
  0xcc   : > { %v1297_v58 = vrot.slane %v1296_v45, 4  ;;  %v2700_v62 = vrot.slane %v2698_v48, 4  ;;  %v2701_v63 = vshll.u32 %v3671_v32, 16  ;;  %v1313_v5 = vshll.u32 %v3514_v54, 16  ;;  %v3676_v26 = vld [vmem:[%s4607_s13 + $0xd4] sm:$0x1] }
  0xcd   : > { %3850 = vmatmul.mubr.msk.bf16.vlgmr.msra.gmra.mrb[0].mxu1 %vm314_vm1, %v4211_v46  ;;  %v3672_v46 = vld [vmem:[%s4607_s13 + $0xc4] sm:$0x1]  ;;  %v1318_v17 = vshrl.u32 %v3515_v1, 16  ;;  %v1327_v20 = vshll.u32 %v3516_v16, 16  ;;  %v2712_v22 = vshrl.u32 %v3673_v6, 16  ;;  %v2715_v28 = vshll.u32 %v3673_v6, 16 }
  0xce   : > { %3858 = vmatpush3.bf16.msra.mxu1 %v4846_v39  ;;  %3853 = vmatprep.mubr.msk.bf16.mxu1 %vm314_vm1, %v4213_v55  ;;  %v1281_v39 = vrot.slane %v1279_v19, 5  ;;  %v2686_v55 = vrot.slane %v2684_v44, 4  ;;  %v2707_v0 = vshll.u32 %v3672_v46, 16  ;;  %v2703_v37 = vrot.slane %v2701_v63, 5  ;;  %v3525_v8 = vld [vmem:[%s4607_s13 + $0xd8] sm:$0xf] }
  0xcf   : > { %4084 = vmatprep.subr.msk.bf16.mxu1 %vm327_vm0, %v1562_v49  ;;  %v3513_v49 = vld [vmem:[%s4607_s13 + $0xc0] sm:$0xf]  ;;  %v1321_v19 = vshll.u32 %v3515_v1, 16  ;;  %v1320_v25 = vrot.slane %v1318_v17, 4  ;;  %v1329_v30 = vrot.slane %v1327_v20, 5  ;;  %v2714_v32 = vrot.slane %v2712_v22, 4 }
  0xd0   : > { %v1282_v31 = vor.u32 %v1281_v39, %v1278_v29  ;;  %v1304_v2 = vshrl.u32 %v3513_v49, 16  ;;  %v2690_v3 = vor.u32 %v2689_v60, %v2686_v55  ;;  %v1307_v4 = vshll.u32 %v3513_v49, 16  ;;  %v3527_v47 = vld [vmem:[%s4607_s13 + $0xe0] sm:$0xf]  ;;  %v3687_v16 = vld [vmem:[%s4607_s13 + $0xe8] sm:$0xf] }
  0xd1   : > { %3930 = vmatmul.mubr.msk.bf16.vlgmr.msra.gmra.mrb[0].mxu0 %vm314_vm1, %v4212_v10  ;;  %v2709_v10 = vrot.slane %v2707_v0, 5  ;;  %v1323_v39 = vrot.slane %v1321_v19, 5  ;;  %v2721_v36 = vshll.u32 %v3674_v18, 16  ;;  %v2726_v38 = vshrl.u32 %v3675_v21, 16  ;;  %v3685_v63 = vld [vmem:[%s4607_s13 + $0xe0] sm:$0xf] }
  0xd2   : > { %3938 = vmatpush3.bf16.msra.mxu0 %v4850_v41  ;;  %3933 = vmatprep.mubr.msk.bf16.mxu0 %vm314_vm1, %v4214_v15  ;;  %v1283_v51 = vrot.slane %v1282_v31, 4  ;;  %v1306_v11 = vrot.slane %v1304_v2, 4  ;;  %v2691_v12 = vrot.slane %v2690_v3, 4  ;;  %v1309_v13 = vrot.slane %v1307_v4, 5  ;;  %v3686_v3 = vld [vmem:[%s4607_s13 + $0xe4] sm:$0x1] }
  0xd3   : > { %4092 = vmatprep.subr.msk.bf16.mxu0 %vm327_vm0, %v4899_v59  ;;  %v1302_v59 = vsel %vm4669_vm4, %v1297_v58, %v1301_v53  ;;  %v1315_v15 = vrot.slane %v1313_v5, 5  ;;  %v1324_v31 = vor.u32 %v1323_v39, %v1320_v25  ;;  %v2729_v43 = vshll.u32 %v3675_v21, 16  ;;  %v3529_v18 = vld [vmem:[%s4607_s13 + $0xe8] sm:$0xf]  ;;  %v3530_v22 = vld [vmem:[%s4607_s13 + $0xec] sm:$0x1] }
  0xd4   : > { %v1288_v41 = vsel %vm4669_vm4, %v1283_v51, %v1287_v34  ;;  %v2696_v23 = vsel %vm4669_vm4, %v2691_v12, %v2695_v61  ;;  %v1310_v24 = vor.u32 %v1309_v13, %v1306_v11  ;;  %v2717_v34 = vrot.slane %v2715_v28, 5  ;;  %v3528_v61 = vld [vmem:[%s4607_s13 + $0xe4] sm:$0x1] }
  0xd5   : > { %3854 = vmatmul.mubr.msk.bf16.gmra.mrb[4].mxu1 %vm314_vm1, %v4215_v42  ;;  %v3519_v7 = vcombine.low %v1288_v41, %v1302_v59  ;;  %v2735_v44 = vshll.u32 %v3676_v26, 16  ;;  %v1325_v48 = vrot.slane %v1324_v31, 4  ;;  %v2728_v49 = vrot.slane %v2726_v38, 4  ;;  %v3689_v31 = vld [vmem:[%s4607_s13 + $0xf0] sm:$0xf] }
  0xd6   : > { %3859 = vmatprep.mubr.msk.bf16.mxu1 %vm314_vm1, %v4885_v35  ;;  %v2704_v35 = vor.u32 %v2703_v37, %v2700_v62  ;;  %v1311_v33 = vrot.slane %v1310_v24, 4  ;;  %v2718_v46 = vor.u32 %v2717_v34, %v2714_v32  ;;  %v2731_v51 = vrot.slane %v2729_v43, 5 }
  0xd7   : > { %v2737_v53 = vrot.slane %v2735_v44, 5  ;;  %v1450_v54 = vshrl.u32 %v3525_v8, 16  ;;  %v1330_v58 = vsel %vm4669_vm4, %v1325_v48, %v1329_v30  ;;  %v1464_v62 = vshrl.u32 %v3527_v47, 16  ;;  %v3531_v30 = vld [vmem:[%s4607_s13 + $0xf0] sm:$0xf] }
  0xd8   : > { %v2705_v29 = vrot.slane %v2704_v35, 4  ;;  %v1316_v45 = vsel %vm4669_vm4, %v1311_v33, %v1315_v15  ;;  %v2719_v55 = vrot.slane %v2718_v46, 4  ;;  %v2732_v60 = vor.u32 %v2731_v51, %v2728_v49  ;;  %v3688_v15 = vld [vmem:[%s4607_s13 + $0xec] sm:$0x1] }
  0xd9   : > { %3934 = vmatmul.mubr.msk.bf16.gmra.mrb[4].mxu0 %vm314_vm1, %v4216_v57  ;;  %v1467_v41 = vshll.u32 %v3527_v47, 16  ;;  %v3520_v0 = vcombine.low %v1316_v45, %v1330_v58  ;;  %v1452_v2 = vrot.slane %v1450_v54, 4  ;;  %v1466_v6 = vrot.slane %v1464_v62, 4  ;;  %v3690_v47 = vld [vmem:[%s4607_s13 + $0xf4] sm:$0x1] }
  0xda   : > { %3939 = vmatprep.mubr.msk.bf16.mxu0 %vm314_vm1, %v4897_v56  ;;  %v2710_v42 = vsel %vm4669_vm4, %v2705_v29, %v2709_v10  ;;  %v3526_v56 = vld [vmem:[%s4607_s13 + $0xdc] sm:$0x1]  ;;  %v2733_v4 = vrot.slane %v2732_v60, 4  ;;  %v1473_v37 = vshll.u32 %v3528_v61, 16  ;;  %v2858_v10 = vshrl.u32 %v3685_v63, 16 }
  0xdb   : > { %v3679_v40 = vcombine.low %v2696_v23, %v2710_v42  ;;  %v1459_v57 = vshll.u32 %v3526_v56, 16  ;;  %v2861_v11 = vshll.u32 %v3685_v63, 16  ;;  %v2872_v17 = vshrl.u32 %v3687_v16, 16  ;;  %v3692_v58 = vld [vmem:[%s4607_s13 + $0xfc] sm:$0x1] }
  0xdc   : > { %v2738_v12 = vsel %vm4669_vm4, %v2733_v4, %v2737_v53  ;;  %v1475_v20 = vrot.slane %v1473_v37, 5  ;;  %v2860_v21 = vrot.slane %v2858_v10, 4  ;;  %v2875_v29 = vshll.u32 %v3687_v16, 16  ;;  %v3691_v53 = vld [vmem:[%s4607_s13 + $0xf8] sm:$0xf] }
  0xdd   : > { %3860 = vmatmul.mubr.msk.bf16.vlgmr.msra.gmra.mrb[0].mxu1 %vm314_vm1, %v4924_v27  ;;  %v2723_v27 = vrot.slane %v2721_v36, 5  ;;  %v1461_v5 = vrot.slane %v1459_v57, 5  ;;  %v2863_v24 = vrot.slane %v2861_v11, 5  ;;  %v2874_v26 = vrot.slane %v2872_v17, 4  ;;  %v3532_v36 = vld [vmem:[%s4607_s13 + $0xf4] sm:$0x1] }
  0xde   : > { %3868 = vmatpush3.bf16.msra.mxu1 %v4908_v9  ;;  %3863 = vmatprep.mubr.msk.bf16.mxu1 %vm314_vm1, %v3519_v7  ;;  %v1453_v9 = vshll.u32 %v3525_v8, 16  ;;  %v1469_v7 = vrot.slane %v1467_v41, 5  ;;  %v2881_v39 = vshll.u32 %v3688_v15, 16  ;;  %v1478_v32 = vshrl.u32 %v3529_v18, 16 }
  0xdf   : > { %v2724_v1 = vsel %vm4669_vm4, %v2719_v55, %v2723_v27  ;;  %v2864_v34 = vor.u32 %v2863_v24, %v2860_v21  ;;  %v1481_v38 = vshll.u32 %v3529_v18, 16  ;;  %v1487_v42 = vshll.u32 %v3530_v22, 16 }
  0xe0   : > { %v1455_v59 = vrot.slane %v1453_v9, 5  ;;  %v1470_v13 = vor.u32 %v1469_v7, %v1466_v6  ;;  %v3680_v35 = vcombine.low %v2724_v1, %v2738_v12  ;;  %v2877_v44 = vrot.slane %v2875_v29, 5  ;;  %v3533_v6 = vld [vmem:[%s4607_s13 + $0xf8] sm:$0xf]  ;;  %v3534_v7 = vld [vmem:[%s4607_s13 + $0xfc] sm:$0x1] }
  0xe1   : > { %3940 = vmatmul.mubr.msk.bf16.vlgmr.msra.gmra.mrb[0].mxu0 %vm314_vm1, %v4939_v50  ;;  %v2883_v8 = vrot.slane %v2881_v39, 5  ;;  %v1480_v56 = vrot.slane %v1478_v32, 4  ;;  %v1483_v45 = vrot.slane %v1481_v38, 5  ;;  %v1489_v46 = vrot.slane %v1487_v42, 5  ;;  %v3535_v12 = vld [vmem:[%s4607_s13 + $0x100] sm:$0xf] }
  0xe2   : > { %3948 = vmatpush3.bf16.msra.mxu0 %v4914_v14  ;;  %3943 = vmatprep.mubr.msk.bf16.mxu0 %vm314_vm1, %v3679_v40  ;;  %v1456_v50 = vor.u32 %v1455_v59, %v1452_v2  ;;  %v2867_v14 = vshll.u32 %v3686_v3, 16  ;;  %v1471_v23 = vrot.slane %v1470_v13, 4  ;;  %v2865_v40 = vrot.slane %v2864_v34, 4  ;;  %v3694_v32 = vld [vmem:[%s4607_s13 + $0x104] sm:$0x1] }
  0xe3   : > { %v1492_v27 = vshrl.u32 %v3531_v30, 16  ;;  %v2878_v48 = vor.u32 %v2877_v44, %v2874_v26  ;;  %v1495_v49 = vshll.u32 %v3531_v30, 16  ;;  %v1501_v51 = vshll.u32 %v3532_v36, 16  ;;  %v3693_v26 = vld [vmem:[%s4607_s13 + $0x100] sm:$0xf] }
  0xe4   : > { %v1457_v19 = vrot.slane %v1456_v50, 4  ;;  %v2869_v25 = vrot.slane %v2867_v14, 5  ;;  %v1476_v33 = vsel %vm4669_vm4, %v1471_v23, %v1475_v20  ;;  %v2886_v55 = vshrl.u32 %v3689_v31, 16  ;;  %v3536_v23 = vld [vmem:[%s4607_s13 + $0x104] sm:$0x1] }
  0xe5   : > { %3864 = vmatmul.mubr.msk.bf16.gmra.mrb[4].mxu1 %vm314_vm1, %v3520_v0  ;;  %v1484_v9 = vor.u32 %v1483_v45, %v1480_v56  ;;  %v1494_v57 = vrot.slane %v1492_v27, 4  ;;  %v2889_v60 = vshll.u32 %v3689_v31, 16  ;;  %v2879_v61 = vrot.slane %v2878_v48, 4  ;;  %v3696_v45 = vld [vmem:[%s4607_s13 + $0x10c] sm:$0x1] }
  0xe6   : > { %v1462_v28 = vsel %vm4669_vm4, %v1457_v19, %v1461_v5  ;;  %v2870_v54 = vsel %vm4669_vm4, %v2865_v40, %v2869_v25  ;;  %v1497_v62 = vrot.slane %v1495_v49, 5  ;;  %v1503_v41 = vrot.slane %v1501_v51, 5 }
  0xe7   : > { %v3541_v43 = vcombine.low %v1462_v28, %v1476_v33  ;;  %v2888_v63 = vrot.slane %v2886_v55, 4  ;;  %v1485_v0 = vrot.slane %v1484_v9, 4  ;;  %v2891_v1 = vrot.slane %v2889_v60, 5  ;;  %v3695_v33 = vld [vmem:[%s4607_s13 + $0x108] sm:$0xf] }
  0xe8   : > { %v2895_v2 = vshll.u32 %v3690_v47, 16  ;;  %v2900_v59 = vshrl.u32 %v3691_v53, 16  ;;  %v2884_v3 = vsel %vm4669_vm4, %v2879_v61, %v2883_v8  ;;  %v1498_v16 = vor.u32 %v1497_v62, %v1494_v57  ;;  %v3537_v47 = vld [vmem:[%s4607_s13 + $0x108] sm:$0xf]  ;;  %v3538_v55 = vld [vmem:[%s4607_s13 + $0x10c] sm:$0x1] }
  0xe9   : > { %3944 = vmatmul.mubr.msk.bf16.gmra.mrb[4].mxu0 %vm314_vm1, %v3680_v35  ;;  %3869 = vmatprep.mubr.msk.bf16.mxu1 %vm314_vm1, %v3541_v43  ;;  %v2903_v4 = vshll.u32 %v3691_v53, 16  ;;  %v2909_v5 = vshll.u32 %v3692_v58, 16  ;;  %v3701_v50 = vcombine.low %v2870_v54, %v2884_v3  ;;  %v1490_v37 = vsel %vm4669_vm4, %v1485_v0, %v1489_v46 }
  0xea   : > { %v2892_v10 = vor.u32 %v2891_v1, %v2888_v63  ;;  %v2897_v11 = vrot.slane %v2895_v2, 5  ;;  %v1499_v13 = vrot.slane %v1498_v16, 4  ;;  %v2902_v15 = vrot.slane %v2900_v59, 4  ;;  %v3540_v2 = vld [vmem:[%s4607_s13 + $0x114] sm:$0x1] }
  0xeb   : > { %v2905_v14 = vrot.slane %v2903_v4, 5  ;;  %v2911_v17 = vrot.slane %v2909_v5, 5  ;;  %3949 = vmatprep.mubr.msk.bf16.mxu0 %vm314_vm1, %v3701_v50  ;;  %v1506_v35 = vshrl.u32 %v3533_v6, 16  ;;  %v1509_v19 = vshll.u32 %v3533_v6, 16  ;;  %v3697_v16 = vld [vmem:[%s4607_s13 + $0x110] sm:$0xf] }
  0xec   : > { %v2893_v18 = vrot.slane %v2892_v10, 4  ;;  %v1515_v20 = vshll.u32 %v3534_v7, 16  ;;  %v1504_v21 = vsel %vm4669_vm4, %v1499_v13, %v1503_v41  ;;  %v1520_v24 = vshrl.u32 %v3535_v12, 16  ;;  %v3539_v41 = vld [vmem:[%s4607_s13 + $0x110] sm:$0xf] }
  0xed   : > { %v2906_v22 = vor.u32 %v2905_v14, %v2902_v15  ;;  %v1523_v25 = vshll.u32 %v3535_v12, 16  ;;  %v3542_v28 = vcombine.low %v1490_v37, %v1504_v21  ;;  %v1508_v39 = vrot.slane %v1506_v35, 4  ;;  %v3698_v12 = vld [vmem:[%s4607_s13 + $0x114] sm:$0x1]  ;;  %v3700_v21 = vld [vmem:[%s4607_s13 + $0x11c] sm:$0x1] }
  0xee   : > { %v2898_v29 = vsel %vm4669_vm4, %v2893_v18, %v2897_v11  ;;  %v1511_v30 = vrot.slane %v1509_v19, 5  ;;  %v1517_v36 = vrot.slane %v1515_v20, 5  ;;  %v1522_v38 = vrot.slane %v1520_v24, 4 }
  0xef   : > { %v2907_v34 = vrot.slane %v2906_v22, 4  ;;  %v1525_v42 = vrot.slane %v1523_v25, 5  ;;  %3870 = vmatmul.mubr.msk.bf16.vlgmr.msra.gmra.mrb[0].mxu1 %vm314_vm1, %v3542_v28  ;;  %v1529_v43 = vshll.u32 %v3536_v23, 16  ;;  %v2914_v44 = vshrl.u32 %v3693_v26, 16 }
  0xf0   : > { %v1512_v31 = vor.u32 %v1511_v30, %v1508_v39  ;;  %v2917_v8 = vshll.u32 %v3693_v26, 16  ;;  %v2923_v46 = vshll.u32 %v3694_v32, 16  ;;  %v2928_v27 = vshrl.u32 %v3695_v33, 16 }
  0xf1   : > { %v2912_v56 = vsel %vm4669_vm4, %v2907_v34, %v2911_v17  ;;  %v1526_v40 = vor.u32 %v1525_v42, %v1522_v38  ;;  %v1531_v51 = vrot.slane %v1529_v43, 5  ;;  %v2916_v53 = vrot.slane %v2914_v44, 4  ;;  %v3699_v17 = vld [vmem:[%s4607_s13 + $0x118] sm:$0xf] }
  0xf2   : > { %v3702_v48 = vcombine.low %v2898_v29, %v2912_v56  ;;  %v1513_v49 = vrot.slane %v1512_v31, 4  ;;  %v2919_v9 = vrot.slane %v2917_v8, 5  ;;  %v2925_v57 = vrot.slane %v2923_v46, 5 }
  0xf3   : > { %v1527_v54 = vrot.slane %v1526_v40, 4  ;;  %v2930_v58 = vrot.slane %v2928_v27, 4  ;;  %v2931_v61 = vshll.u32 %v3695_v33, 16  ;;  %v2937_v62 = vshll.u32 %v3696_v45, 16 }
  0xf4   : > { %3950 = vmatmul.mubr.msk.bf16.vlgmr.msra.gmra.mrb[0].mxu0 %vm314_vm1, %v3702_v48  ;;  %v1518_v60 = vsel %vm4669_vm4, %v1513_v49, %v1517_v36  ;;  %v1534_v63 = vshrl.u32 %v3537_v47, 16  ;;  %v2920_v1 = vor.u32 %v2919_v9, %v2916_v53  ;;  %v1537_v59 = vshll.u32 %v3537_v47, 16 }
  0xf5   : > { %v1532_v0 = vsel %vm4669_vm4, %v1527_v54, %v1531_v51  ;;  %v1543_v3 = vshll.u32 %v3538_v55, 16  ;;  %v2933_v5 = vrot.slane %v2931_v61, 5  ;;  %v2939_v6 = vrot.slane %v2937_v62, 5 }
  0xf6   : > { %v3543_v4 = vcombine.low %v1518_v60, %v1532_v0  ;;  %v1536_v7 = vrot.slane %v1534_v63, 4  ;;  %v2921_v50 = vrot.slane %v2920_v1, 4  ;;  %v1539_v37 = vrot.slane %v1537_v59, 5 }
  0xf7   : > { %v1545_v10 = vrot.slane %v1543_v3, 5  ;;  %v1548_v11 = vshrl.u32 %v3539_v41, 16  ;;  %v2934_v13 = vor.u32 %v2933_v5, %v2930_v58  ;;  %v1551_v15 = vshll.u32 %v3539_v41, 16 }
  0xf8   : > { %3873 = vmatprep.mubr.msk.bf16.mxu1 %vm314_vm1, %v3543_v4  ;;  %v1557_v14 = vshll.u32 %v3540_v2, 16  ;;  %v2942_v18 = vshrl.u32 %v3697_v16, 16  ;;  %v2926_v35 = vsel %vm4669_vm4, %v2921_v50, %v2925_v57  ;;  %v1540_v19 = vor.u32 %v1539_v37, %v1536_v7 }
  0xf9   : > { %v1550_v20 = vrot.slane %v1548_v11, 4  ;;  %v2945_v22 = vshll.u32 %v3697_v16, 16  ;;  %v2935_v23 = vrot.slane %v2934_v13, 4  ;;  %v1553_v24 = vrot.slane %v1551_v15, 5 }
  0xfa   : > { %v1559_v25 = vrot.slane %v1557_v14, 5  ;;  %v2944_v26 = vrot.slane %v2942_v18, 4  ;;  %v1541_v28 = vrot.slane %v1540_v19, 4  ;;  %v2951_v39 = vshll.u32 %v3698_v12, 16 }
  0xfb   : > { %v2947_v29 = vrot.slane %v2945_v22, 5  ;;  %v2956_v30 = vshrl.u32 %v3699_v17, 16  ;;  %v2940_v32 = vsel %vm4669_vm4, %v2935_v23, %v2939_v6  ;;  %v1554_v33 = vor.u32 %v1553_v24, %v1550_v20 }
  0xfc   : > { %v2959_v34 = vshll.u32 %v3699_v17, 16  ;;  %v2965_v36 = vshll.u32 %v3700_v21, 16  ;;  %v3703_v38 = vcombine.low %v2926_v35, %v2940_v32  ;;  %v1546_v42 = vsel %vm4669_vm4, %v1541_v28, %v1545_v10 }
  0xfd   : > { %v2948_v31 = vor.u32 %v2947_v29, %v2944_v26  ;;  %v1555_v43 = vrot.slane %v1554_v33, 4  ;;  %v2953_v44 = vrot.slane %v2951_v39, 5  ;;  %v2958_v8 = vrot.slane %v2956_v30, 4 }
  0xfe   : > { %v2961_v56 = vrot.slane %v2959_v34, 5  ;;  %3953 = vmatprep.mubr.msk.bf16.mxu0 %vm314_vm1, %v3703_v38  ;;  %v2967_v27 = vrot.slane %v2965_v36, 5  ;;  %vm3071_vm5 = vcmask 64512  }
  0xff   : > { %v2949_v40 = vrot.slane %v2948_v31, 4  ;;  %v1560_v45 = vsel %vm4669_vm4, %v1555_v43, %v1559_v25 }
 0x100   : > { %v2962_v46 = vor.u32 %v2961_v56, %v2958_v8  ;;  %v3544_v47 = vcombine.low %v1546_v42, %v1560_v45 }
 0x101   : > { %v2954_v48 = vsel %vm4669_vm4, %v2949_v40, %v2953_v44 }
 0x102   : > { %v2963_v49 = vrot.slane %v2962_v46, 4  ;;  %3874 = vmatmul.mubr.msk.bf16.gmra.mrb[4].mxu1 %vm314_vm1, %v3544_v47 }
 0x104   : > { %v2968_v51 = vsel %vm4669_vm4, %v2963_v49, %v2967_v27 }
 0x105   : > { %v3704_v53 = vcombine.low %v2954_v48, %v2968_v51 }
 0x107   : > { %3954 = vmatmul.mubr.msk.bf16.gmra.mrb[4].mxu0 %vm314_vm1, %v3704_v53 }
 0x1c2   : > { %v3871_v55 = vpop.f32.mrb[0].mxu1 }
 0x1c3   : > { %v1624_v54 = vpop.f32.mrb[1].mxu1 }
 0x1c4   : > { %v3872_v9 = vpop.f32.mrb[2].mxu1 }
 0x1c5   : > { %v1627_v57 = vpop.f32.mrb[3].mxu1 }
 0x1c7   : > { %v3951_v58 = vpop.f32.mrb[0].mxu0 }
 0x1c8   : > { %v3957_v60 = vadd.f32 %v3951_v58, %v3871_v55  ;;  %v3032_v61 = vpop.f32.mrb[1].mxu0 }
 0x1c9   : > { %v3958_v62 = vadd.f32 %v3032_v61, %v1624_v54  ;;  %v3952_v41 = vpop.f32.mrb[2].mxu0 }
 0x1ca   : > { %3074 = vst.msk [vmem:[%s5056_s25 + $0x10] sm:$0xff] %vm3071_vm5, %v3957_v60  ;;  %v3959_v52 = vadd.f32 %v3952_v41, %v3872_v9  ;;  %v3035_v63 = vpop.f32.mrb[3].mxu0  ;;  %v3145_v2 = vmul.f32 %v3957_v60, %v3957_v60  ;;  %v3123_v5 = vsel %vm3071_vm5, %v3957_v60, 0.0 }
 0x1cb   : > { %3072 = vst.msk [vmem:[%s5056_s25] sm:$0xff] %vm3071_vm5, %v3958_v62  ;;  %v3143_v0 = vmul.f32 %v3958_v62, %v3958_v62  ;;  %v3960_v1 = vadd.f32 %v3035_v63, %v1627_v57  ;;  %v3120_v59 = vsel %vm3071_vm5, %v3958_v62, 0.0 }
 0x1cc   : > { %3075 = vst.msk [vmem:[%s5056_s25 + $0x18] sm:$0xff] %vm3071_vm5, %v3959_v52  ;;  %v3146_v7 = vmul.f32 %v3959_v52, %v3959_v52  ;;  %v3154_v11 = vsel %vm3071_vm5, %v3145_v2, 0.0  ;;  %v3125_v12 = vsel %vm3071_vm5, %v3959_v52, 0.0 }
 0x1cd   : > { %3073 = vst.msk [vmem:[%s5056_s25 + $0x8] sm:$0xff] %vm3071_vm5, %v3960_v1  ;;  %v3121_v3 = vsel %vm3071_vm5, %v3960_v1, 0.0  ;;  %v3144_v16 = vmul.f32 %v3960_v1, %v3960_v1  ;;  %v3151_v6 = vsel %vm3071_vm5, %v3143_v0, 0.0 }
 0x1ce   : > { %v3122_v4 = vadd.f32 %v3121_v3, %v3120_v59  ;;  %v3156_v14 = vsel %vm3071_vm5, %v3146_v7, 0.0 }
 0x1cf   : > { %v3152_v50 = vsel %vm3071_vm5, %v3144_v16, 0.0 }
 0x1d0   : > { %v3124_v37 = vadd.f32 %v3123_v5, %v3122_v4  ;;  %v3153_v10 = vadd.f32 %v3152_v50, %v3151_v6 }
 0x1d2   : > { %v3155_v13 = vadd.f32 %v3154_v11, %v3153_v10  ;;  %v3126_v15 = vadd.f32 %v3125_v12, %v3124_v37 }
 0x1d4   : > { %v3157_v17 = vadd.f32 %v3156_v14, %v3155_v13 }
 0x1d5   : > { %v3875_v18 = vpop.f32.mrb[4].mxu1 }
 0x1d6   : > { %v1640_v35 = vpop.f32.mrb[5].mxu1 }
 0x1d7   : > { %v3876_v19 = vpop.f32.mrb[6].mxu1 }
 0x1d8   : > { %v1643_v20 = vpop.f32.mrb[7].mxu1 }
 0x1da   : > { %v3955_v21 = vpop.f32.mrb[4].mxu0 }
 0x1db   : > { %v3961_v22 = vadd.f32 %v3955_v21, %v3875_v18  ;;  %v3048_v23 = vpop.f32.mrb[5].mxu0 }
 0x1dc   : > { %v3962_v24 = vadd.f32 %v3048_v23, %v1640_v35  ;;  %v3956_v25 = vpop.f32.mrb[6].mxu0 }
 0x1dd   : > { %3078 = vst.msk [vmem:[%s5056_s25 + $0x30] sm:$0xff] %vm3071_vm5, %v3961_v22  ;;  %v3963_v26 = vadd.f32 %v3956_v25, %v3876_v19  ;;  %v3051_v28 = vpop.f32.mrb[7].mxu0  ;;  %v3149_v33 = vmul.f32 %v3961_v22, %v3961_v22 }
 0x1de   : > { %3076 = vst.msk [vmem:[%s5056_s25 + $0x20] sm:$0xff] %vm3071_vm5, %v3962_v24  ;;  %v3127_v29 = vsel %vm3071_vm5, %v3962_v24, 0.0  ;;  %v3147_v39 = vmul.f32 %v3962_v24, %v3962_v24  ;;  %v3964_v30 = vadd.f32 %v3051_v28, %v1643_v20 }
 0x1df   : > { %v3128_v32 = vadd.f32 %v3127_v29, %v3126_v15  ;;  %3079 = vst.msk [vmem:[%s5056_s25 + $0x38] sm:$0xff] %vm3071_vm5, %v3963_v26 }
 0x1e0   : > { %v3158_v34 = vsel %vm3071_vm5, %v3147_v39, 0.0  ;;  %3077 = vst.msk [vmem:[%s5056_s25 + $0x28] sm:$0xff] %vm3071_vm5, %v3964_v30  ;;  %v3129_v36 = vsel %vm3071_vm5, %v3964_v30, 0.0  ;;  %v3148_v38 = vmul.f32 %v3964_v30, %v3964_v30 }
 0x1e1   : > { %v3159_v42 = vadd.f32 %v3158_v34, %v3157_v17  ;;  %v3130_v31 = vadd.f32 %v3129_v36, %v3128_v32 }
 0x1e2   : > { %4288 = shalt.err (!%p4285_p9)
}
 0x1e3   : > { %s4289_s13 = scalar_lea.hbm %s5081_s6, 1024  ;;  %s4293_s10 = scalar_lea.hbm %s5220_s2, 2048 }
 0x1e4   : > { %p4290_p1 = scmp.ne.s32.totalorder %s5081_s6, %s4289_s13  ;;  %p4294_p7 = scmp.lt.u32.totalorder %s5081_s6, %s5220_s2 }
 0x1e5   : > { %p4295_p11 = scmp.lt.u32.totalorder %s4293_s10, %s4289_s13  ;;  %p4297_p6 = scmp.lt.u32.totalorder %s4289_s13, %s5081_s6 }
 0x1e6   : > { %p4291_p2 = pnand %p4290_p1, %p4549_p10 }
 0x1e7   : > { %p4296_p4 = por %p4295_p11, %p4294_p7 }
 0x1e8   : > { %p4292_p3 = pneg %p4291_p2 }
 0x1e9   : > { %p4298_p8 = por %p4297_p6, %p4296_p4 }
 0x1eb   : > { %p4299_p12 = pnand %p4298_p8, %p4292_p3 }
 0x1ed   : > { %4302 = shalt.err (!%p4299_p12)
}
 0x1ee   : > { %s4430_s30 = smov 128   ;;  %s4431_s27 = smov 8   ;;  %v3131_v43 = vsel %vm3071_vm5, %v3961_v22, 0.0  ;;  %v3150_v44 = vmul.f32 %v3963_v26, %v3963_v26  ;;  %v3160_v8 = vsel %vm3071_vm5, %v3148_v38, 0.0  ;;  %v3162_v45 = vsel %vm3071_vm5, %v3149_v33, 0.0 }
 0x1ef   : > { %4102 = dma.vmem_to_hbm [thread:$0]  (%p4549_p10), %s5083_s11, 1024, %s5081_s6, %s3174_s7, %s4430_s30, %s4430_s30, %s4431_s27   ;;  %v3132_v56 = vadd.f32 %v3131_v43, %v3130_v31  ;;  %v3161_v40 = vadd.f32 %v3160_v8, %v3159_v42  ;;  %v3133_v46 = vsel %vm3071_vm5, %v3963_v26, 0.0  ;;  %vm3141_vm6 = vcmask 57344  }
 0x1f0   : > { %v3164_v48 = vsel %vm3071_vm5, %v3150_v44, 0.0  ;;  %s3178_s11 = sand.u32 1, %s4490_s21   ;;  %s3712_s6 = sshll.u32 %s4413_s18, 4 }
 0x1f1   : > { %v3134_v27 = vadd.f32 %v3133_v46, %v3132_v56  ;;  %v3163_v47 = vadd.f32 %v3162_v45, %v3161_v40  ;;  %s258_s7 = scalar_lea.vmem [#allocation8], %s4603_s9  ;;  %s264_s28 = scalar_lea.vmem [#allocation10], %s4603_s9 }
 0x1f2   : > { %s3214_s12 = sshll.u32 %s258_s7, 4  ;;  %s3228_s13 = sshll.u32 %s264_s28, 4  ;;  %s5134_s12 = int_to_ptr.vmem [resolvable:$true] %s3214_s12  ;;  %s5142_s13 = int_to_ptr.vmem [resolvable:$true] %s3228_s13 }
 0x1f3   : > { %v3135_v49 = vrot.slane %v3134_v27, 4  ;;  %v3165_v51 = vadd.f32 %v3164_v48, %v3163_v47  ;;  %s5132_s10 = scalar_lea.hbm %s5221_s3, %s3712_s6  ;;  %s5140_s14 = scalar_lea.hbm %s5222_s4, %s3712_s6 }
 0x1f4   : > { %s5144_s26 = scalar_lea.sflag [#allocation9], %s3178_s11  ;;  %s4303_s30 = scalar_lea.vmem %s5134_s12, 16 }
 0x1f5   : > { %v3136_v53 = vadd.f32 %v3135_v49, %v3134_v27  ;;  %v3166_v55 = vrot.slane %v3165_v51, 4  ;;  %p4304_p13 = scmp.ne.s32.totalorder %s5134_s12, %s4303_s30  ;;  %s4432_s27 = smov [#allocation8]  }
 0x1f6   : > { %s4307_s23 = sshll.u32 %s4432_s27, 4  ;;  %s4308_s23 = int_to_ptr.vmem [resolvable:$false] %s4307_s23 }
 0x1f7   : > { %v3137_v54 = vrot.slane %v3136_v53, 2  ;;  %v3167_v9 = vadd.f32 %v3166_v55, %v3165_v51  ;;  %p4305_p0 = pnand %p4304_p13, %p4549_p10  ;;  %s4309_s25 = scalar_lea.vmem %s4308_s23, 32 }
 0x1f8   : > { %p4310_p9 = scmp.lt.s32.totalorder %s5134_s12, %s4308_s23  ;;  %p4311_p1 = scmp.lt.s32.totalorder %s4309_s25, %s4303_s30 }
 0x1f9   : > { %v3138_v57 = vadd.f32 %v3137_v54, %v3136_v53  ;;  %v3168_v58 = vrot.slane %v3167_v9, 2  ;;  %p4306_p5 = pneg %p4305_p0 }
 0x1fa   : > { %p4312_p2 = por %p4311_p1, %p4310_p9 }
 0x1fb   : > { %v3169_v60 = vadd.f32 %v3168_v58, %v3167_v9  ;;  %v3139_v61 = vrot.slane %v3138_v57, 1 }
 0x1fc   : > { %p4313_p3 = pnand %p4312_p2, %p4306_p5 }
 0x1fd   : > { %v3170_v62 = vrot.slane %v3169_v60, 1  ;;  %v3140_v41 = vadd.f32 %v3139_v61, %v3138_v57 }
 0x1ff   : > { %3142 = vst.msk [vmem:[%s258_s7] sm:$0x1] %vm3141_vm6, %v3140_v41  ;;  %v3171_v52 = vadd.f32 %v3170_v62, %v3169_v60 }
 0x200   : > { %4316 = shalt.err (!%p4313_p3)
}
 0x201   : > { %s4317_s11 = scalar_lea.hbm %s5132_s10, 16  ;;  %s4321_s18 = scalar_lea.hbm %s5221_s3, 32 }
 0x202   : > { %p4318_p7 = scmp.ne.s32.totalorder %s5132_s10, %s4317_s11  ;;  %p4322_p6 = scmp.lt.u32.totalorder %s5132_s10, %s5221_s3 }
 0x203   : > { %p4323_p8 = scmp.lt.u32.totalorder %s4321_s18, %s4317_s11  ;;  %p4325_p13 = scmp.lt.u32.totalorder %s4317_s11, %s5132_s10 }
 0x204   : > { %p4319_p11 = pnand %p4318_p7, %p4549_p10 }
 0x205   : > { %p4324_p12 = por %p4323_p8, %p4322_p6 }
 0x206   : > { %p4320_p4 = pneg %p4319_p11 }
 0x207   : > { %p4326_p0 = por %p4325_p13, %p4324_p12 }
 0x209   : > { %p4327_p5 = pnand %p4326_p0, %p4320_p4 }
 0x20b   : > { %4330 = shalt.err (!%p4327_p5)
}
 0x20c   : > { %4103 = dma.vmem_to_hbm [thread:$0]  (%p4549_p10), %s5134_s12, 16, %s5132_s10, %s5144_s26   ;;  %3172 = vst.msk [vmem:[%s264_s28] sm:$0x1] %vm3141_vm6, %v3171_v52 }
 0x20d   : > { %s4331_s30 = scalar_lea.vmem %s5142_s13, 16  ;;  %s4433_s23 = smov [#allocation10]  }
 0x20e   : > { %p4332_p9 = scmp.ne.s32.totalorder %s5142_s13, %s4331_s30  ;;  %s4335_s25 = sshll.u32 %s4433_s23, 4  ;;  %s4336_s25 = int_to_ptr.vmem [resolvable:$false] %s4335_s25 }
 0x20f   : > { %s4337_s11 = scalar_lea.vmem %s4336_s25, 32  ;;  %p4338_p3 = scmp.lt.s32.totalorder %s5142_s13, %s4336_s25 }
 0x210   : > { %p4333_p1 = pnand %p4332_p9, %p4549_p10  ;;  %p4339_p7 = scmp.lt.s32.totalorder %s4337_s11, %s4331_s30 }
 0x212   : > { %p4334_p2 = pneg %p4333_p1  ;;  %p4340_p11 = por %p4339_p7, %p4338_p3 }
 0x214   : > { %p4341_p4 = pnand %p4340_p11, %p4334_p2 }
 0x216   : > { %4344 = shalt.err (!%p4341_p4)
}
 0x217   : > { %s4345_s9 = scalar_lea.hbm %s5140_s14, 16  ;;  %s4349_s10 = scalar_lea.hbm %s5222_s4, 32 }
 0x218   : > { %p4346_p6 = scmp.ne.s32.totalorder %s5140_s14, %s4345_s9  ;;  %p4350_p13 = scmp.lt.u32.totalorder %s5140_s14, %s5222_s4 }
 0x219   : > { %p4351_p0 = scmp.lt.u32.totalorder %s4349_s10, %s4345_s9  ;;  %p4353_p9 = scmp.lt.u32.totalorder %s4345_s9, %s5140_s14 }
 0x21a   : > { %p4347_p8 = pnand %p4346_p6, %p4549_p10 }
 0x21b   : > { %p4352_p5 = por %p4351_p0, %p4350_p13 }
 0x21c   : > { %p4348_p12 = pneg %p4347_p8 }
 0x21d   : > { %p4354_p1 = por %p4353_p9, %p4352_p5 }
 0x21f   : > { %p4355_p2 = pnand %p4354_p1, %p4348_p12 }
 0x221   : > { %4358 = shalt.err (!%p4355_p2)
}
 0x222   : > { %4104 = dma.vmem_to_hbm [thread:$0]  (%p4549_p10), %s5142_s13, 16, %s5140_s14, %s5144_s26  }
 0x223 PF: > { %s3240_s18 = sand.u32 1, %s4401_s15   ;;  %p5239_p3 = scmp.ne.s32.totalorder %s5227_s24, 0 }
 0x224   : > { %p5240_p7 = scmp.ge.s32.totalorder %s4421_s20, 2  ;;  %s3241_s21 = scalar_lea.sflag [#allocation4], %s3240_s18 }
 0x226   : > { %p4117_p11 = pnand %p5240_p7, %p5239_p3 }
 0x228   : > { %4392 = dma.done.wait (!%p4117_p11), %s3241_s21, 1024  }
 0x229   : > { %4394 = vsyncadd (!%p4117_p11), %s3241_s21, 4294966272  ;;  %s3249_s27 = sand.u32 1, %s3405_s22  }
 0x22a   : > { %s3250_s30 = scalar_lea.sflag [#allocation9], %s3249_s27 }
 0x22b   : > { %4396 = dma.done.wait (!%p4117_p11), %s3250_s30, 32  }
 0x22c   : > { %4398 = vsyncadd (!%p4117_p11), %s3250_s30, 4294967264  ;;  %s25_s20 = sadd.s32 1, %s4421_s20   ;;  %s5241_s15 = smov %s4405_s16 }
 0x22d   : > { %p22_p10 = scmp.ge.s32.totalorder %s25_s20, 4   ;;  %s5242_s16 = smov %s4409_s17 }
 0x22e   : > { %s5243_s17 = smov %s4558_s8  ;;  %s5244_s18 = smov %s4417_s19 }
 0x22f   : > { %s5245_s19 = smov %s5247_s29  ;;  %24 = sbr.rel (!%p22_p10) target bundleno = 9 (0x9), region = 132 }
 0x236   :  { %3262 = vsyncpa [#allocation3], 1 }
 0x237   :  { %3264 = vsyncpa [#allocation3 + $0x1], 1 }
 0x238   :  { %3265 = vsyncpa [#allocation6], 1 }
 0x239   :  { %3266 = vsyncpa [#allocation4], 1 }
 0x23a   :  { %3268 = vsyncpa [#allocation4 + $0x1], 1 }
 0x23b   :  { %3269 = vsyncpa [#allocation9], 1 }
 0x23c   :  { %3271 = vsyncpa [#allocation9 + $0x1], 1 }

</bundles_post_ra>
